<compile_context>
chip_gen: v7x
topology: tpu7x:2x2x1
jax: 0.10.0
libtpu: 0.0.40
codegen_flags: <defaults>
</compile_context>

<pallas_src>
import jax
import jax.numpy as jnp
from jax.experimental import pallas as pl
from jax.experimental.pallas import tpu as pltpu


def _round_up(x, m):
    return ((x + m - 1) // m) * m


def _pick_tm(B):
    """Batch tile size."""
    if B <= 128:
        # Single tile: too small to split usefully across cores; round up to a
        # multiple of 16 for bf16 sublane packing of the activations.
        return max(_round_up(B, 16), 16)
    if B <= 1024:
        # >= 2 grid steps so ("parallel",) lets v7x's two TensorCores both get
        # work; no effect on single-TC v5e/v6e.
        return _round_up(pl.cdiv(B, 2), 16)
    # Large B: 512-row tiles keep the streamed x/out DMAs near the HBM
    # roofline (measured ~85%+ at 512 vs ~60% at 256) while the f32
    # activations stay at a few MiB even on v7x's 64 MiB VMEM.
    return 512


def _pad_params(weights, biases):
    """Zero-pad every intermediate width up to a multiple of 128 lanes.

    Numerically identical: padded columns get zero weights + zero bias, so the
    pre-activation is 0, ReLU(0)=0, and the matching zero rows of the next
    weight contribute nothing.  The final output width is left untouched.
    """
    n = len(weights)
    wp, bp = [], []
    prev_pad = 0
    for l, (w, b) in enumerate(zip(weights, biases)):
        d_in, d_out = w.shape
        d_out_pad = d_out if l == n - 1 else _round_up(d_out, 128)
        wp.append(jnp.pad(w, ((0, prev_pad), (0, d_out_pad - d_out))))
        bp.append(jnp.pad(b, ((0, 0), (0, d_out_pad - d_out))))
        prev_pad = d_out_pad - d_out
    return wp, bp


def _make_fused_ae_kernel(n_layers, return_error):
    """Kernel body for an n_layers-deep fused dense auto-encoder."""

    def kernel(x_ref, *refs):
        # refs = (w_0, b_0, w_1, b_1, ..., w_{L-1}, b_{L-1}, out_ref)
        out_ref = refs[-1]
        x_f32 = x_ref[...]
        # One-time cast of the activation tile to bf16; rides the VPU while
        # the MXU is the binding unit.
        h = x_f32.astype(jnp.bfloat16)
        acc = None
        for l in range(n_layers):
            w = refs[2 * l][...]        # (d_in, d_out) bf16, VMEM-resident
            b = refs[2 * l + 1][...]    # (1, d_out)    f32, broadcast once
            # bf16 x bf16 -> f32 accumulation on the MXU.
            acc = jnp.dot(h, w, preferred_element_type=jnp.float32) + b
            if l < n_layers - 1:
                # Epilogue in f32 (no bf16 VPU on v5e), narrow for next pass.
                h = jnp.maximum(acc, 0.0).astype(jnp.bfloat16)
        if return_error:
            # Fused DCASE anomaly score: per-frame mean squared recon error.
            err = acc - x_f32
            out_ref[...] = jnp.mean(err * err, axis=-1, keepdims=True)
        else:
            out_ref[...] = acc.astype(out_ref.dtype)

    return kernel


def _const_spec(shape, single_buffer):
    """Whole-array, constant-index parameter block (DMA'd once)."""
    if single_buffer and hasattr(pl, "Buffered"):
        try:
            # Constant index_map -> fetched once; no need for a double buffer.
            return pl.BlockSpec(shape, lambda i: (0, 0),
                                pipeline_mode=pl.Buffered(1))
        except TypeError:
            pass
    return pl.BlockSpec(shape, lambda i: (0, 0))


def ae_forward(x, weights, biases, *, tm=None, return_error=False):
    """Fused dense auto-encoder forward pass on TPU via Pallas.

    x       : (B, D) float32 — flattened log-mel frame stacks.
    weights : list of (d_in, d_out) bfloat16 matrices (d_in[0] == D,
              d_out[-1] == D).
    biases  : list of (1, d_out) float32 vectors.
    returns : (B, D) float32 reconstruction, or (B, 1) float32 per-frame
              mean squared reconstruction error if return_error=True.
    """
    B, D = x.shape
    n_layers = len(weights)
    assert len(biases) == n_layers

    weights_p, biases_p = _pad_params(weights, biases)
    flat_params = [a for wb in zip(weights_p, biases_p) for a in wb]

    if tm is None:
        tm = _pick_tm(B)
    grid_m = pl.cdiv(B, tm)
    B_pad = grid_m * tm
    if B_pad != B:
        # Pad the batch instead of hard-failing on non-divisible B.
        x = jnp.pad(x, ((0, B_pad - B), (0, 0)))

    out_width = 1 if return_error else D
    out_dtype = jnp.float32 if return_error else x.dtype

    # VMEM budget: double-buffered params (covers the no-Buffered fallback) +
    # double-buffered x/out tiles + live f32/bf16 activations, small margin,
    # capped at 56 MiB (< v7x's 64 MiB physical, leaves compiler scratch room).
    param_bytes = sum(a.size * a.dtype.itemsize for a in flat_params)
    widest = max([D] + [w.shape[1] for w in weights_p])
    io_bytes = 2 * tm * D * 4 + 2 * tm * out_width * 4
    act_bytes = 4 * tm * widest * 4
    needed = 2 * param_bytes + io_bytes + act_bytes
    vmem_limit = int(min(max(needed + (4 << 20), 16 << 20), 56 << 20))

    def run(single_buffer_params):
        in_specs = [pl.BlockSpec((tm, D), lambda i: (i, 0))]   # x: tiled batch
        for w, b in zip(weights_p, biases_p):
            in_specs.append(_const_spec(w.shape, single_buffer_params))
            in_specs.append(_const_spec(b.shape, single_buffer_params))
        out_spec = pl.BlockSpec((tm, out_width), lambda i: (i, 0))

        return pl.pallas_call(
            _make_fused_ae_kernel(n_layers, return_error),
            out_shape=jax.ShapeDtypeStruct((B_pad, out_width), out_dtype),
            grid_spec=pltpu.PrefetchScalarGridSpec(
                num_scalar_prefetch=0,
                grid=(grid_m,),
                in_specs=in_specs,
                out_specs=out_spec,
            ),
            compiler_params=pltpu.CompilerParams(
                dimension_semantics=("parallel",),  # v7x: batch over 2 TCs
                vmem_limit_bytes=vmem_limit,
            ),
        )(x, *flat_params)

    try:
        out = run(True)
    except Exception:
        # Fallback for jax versions that reject single-buffered BlockSpecs.
        out = run(False)

    return out[:B]


def _reference(x, weights, biases):
    # Same precision contract as the kernel: bf16 matmul operands, f32 accum.
    h = x.astype(jnp.bfloat16)
    for l, (w, b) in enumerate(zip(weights, biases)):
        acc = jnp.dot(h, w, preferred_element_type=jnp.float32) + b
        if l < len(weights) - 1:
            h = jnp.maximum(acc, 0.0).astype(jnp.bfloat16)
        else:
            return acc.astype(x.dtype)


if __name__ == "__main__":
    key = jax.random.PRNGKey(0)

    # Small shapes consistent with the DCASE baseline AE: B flattened log-mel
    # frame stacks of D features, encoder/decoder hidden sizes + bottleneck.
    B, D = 16, 256
    dims = (D, 128, 128, 64, 128, 128, D)  # 6 fused dense layers

    keys = jax.random.split(key, 1 + 2 * (len(dims) - 1))
    x = jax.random.normal(keys[0], (B, D), dtype=jnp.float32)

    weights, biases = [], []
    for l in range(len(dims) - 1):
        kw, kb = keys[1 + 2 * l], keys[2 + 2 * l]
        w = (jax.random.normal(kw, (dims[l], dims[l + 1]), dtype=jnp.float32)
             * 0.05).astype(jnp.bfloat16)  # params stored bf16 for the MXU
        b = jax.random.normal(kb, (1, dims[l + 1]), dtype=jnp.float32) * 0.01
        weights.append(w)
        biases.append(b)

    # Full reconstruction output.
    out = ae_forward(x, weights, biases)
    out = jax.block_until_ready(out)
    ref = _reference(x, weights, biases)
    assert out.shape == (B, D)
    assert jnp.allclose(out, ref, atol=2e-2, rtol=2e-2), "recon mismatch"

    # Fused anomaly-score output (per-frame mean squared reconstruction error).
    err = ae_forward(x, weights, biases, return_error=True)
    err = jax.block_until_ready(err)
    ref_err = jnp.mean((ref - x) ** 2, axis=-1, keepdims=True)
    assert err.shape == (B, 1)
    assert jnp.allclose(err, ref_err, atol=2e-2, rtol=2e-2), "error mismatch"

    print("KERNEL_OK")
</pallas_src>

<mosaic_0001>
module attributes {stable_mosaic.version = 11 : i64} {
  func.func @kernel(%arg0: i32, %arg1: memref<16x256xf32, #tpu.memory_space<vmem>>, %arg2: memref<256x128xbf16, #tpu.memory_space<vmem>>, %arg3: memref<1x128xf32, #tpu.memory_space<vmem>>, %arg4: memref<128x128xbf16, #tpu.memory_space<vmem>>, %arg5: memref<1x128xf32, #tpu.memory_space<vmem>>, %arg6: memref<128x128xbf16, #tpu.memory_space<vmem>>, %arg7: memref<1x128xf32, #tpu.memory_space<vmem>>, %arg8: memref<128x128xbf16, #tpu.memory_space<vmem>>, %arg9: memref<1x128xf32, #tpu.memory_space<vmem>>, %arg10: memref<128x128xbf16, #tpu.memory_space<vmem>>, %arg11: memref<1x128xf32, #tpu.memory_space<vmem>>, %arg12: memref<128x256xbf16, #tpu.memory_space<vmem>>, %arg13: memref<1x256xf32, #tpu.memory_space<vmem>>, %arg14: memref<16x256xf32, #tpu.memory_space<vmem>>) attributes {dimension_semantics = [#tpu.dimension_semantics<parallel>], iteration_bounds = array<i64: 1>, scalar_prefetch = 0 : i64, scratch_operands = 0 : i64, tpu.core_type = #tpu.core_type<tc>, window_params = [{transform_indices = @transform_0, window_bounds = array<i64: 16, 256>}, {pipeline_mode = #tpu.pipeline_mode<synchronous>, transform_indices = @transform_1, window_bounds = array<i64: 256, 128>}, {pipeline_mode = #tpu.pipeline_mode<synchronous>, transform_indices = @transform_2, window_bounds = array<i64: 1, 128>}, {pipeline_mode = #tpu.pipeline_mode<synchronous>, transform_indices = @transform_3, window_bounds = array<i64: 128, 128>}, {pipeline_mode = #tpu.pipeline_mode<synchronous>, transform_indices = @transform_4, window_bounds = array<i64: 1, 128>}, {pipeline_mode = #tpu.pipeline_mode<synchronous>, transform_indices = @transform_5, window_bounds = array<i64: 128, 128>}, {pipeline_mode = #tpu.pipeline_mode<synchronous>, transform_indices = @transform_6, window_bounds = array<i64: 1, 128>}, {pipeline_mode = #tpu.pipeline_mode<synchronous>, transform_indices = @transform_7, window_bounds = array<i64: 128, 128>}, {pipeline_mode = #tpu.pipeline_mode<synchronous>, transform_indices = @transform_8, window_bounds = array<i64: 1, 128>}, {pipeline_mode = #tpu.pipeline_mode<synchronous>, transform_indices = @transform_9, window_bounds = array<i64: 128, 128>}, {pipeline_mode = #tpu.pipeline_mode<synchronous>, transform_indices = @transform_10, window_bounds = array<i64: 1, 128>}, {pipeline_mode = #tpu.pipeline_mode<synchronous>, transform_indices = @transform_11, window_bounds = array<i64: 128, 256>}, {pipeline_mode = #tpu.pipeline_mode<synchronous>, transform_indices = @transform_12, window_bounds = array<i64: 1, 256>}, {transform_indices = @transform_13, window_bounds = array<i64: 16, 256>}]} {
    %c0 = arith.constant 0 : index
    %c0_0 = arith.constant 0 : index
    %0 = vector.load %arg1[%c0, %c0_0] : memref<16x256xf32, #tpu.memory_space<vmem>>, vector<16x256xf32>
    %1 = arith.truncf %0 : vector<16x256xf32> to vector<16x256xbf16>
    %c0_1 = arith.constant 0 : index
    %c0_2 = arith.constant 0 : index
    %2 = vector.load %arg2[%c0_1, %c0_2] : memref<256x128xbf16, #tpu.memory_space<vmem>>, vector<256x128xbf16>
    %c0_3 = arith.constant 0 : index
    %c0_4 = arith.constant 0 : index
    %3 = vector.load %arg3[%c0_3, %c0_4] : memref<1x128xf32, #tpu.memory_space<vmem>>, vector<1x128xf32>
    %cst = arith.constant dense<0.000000e+00> : vector<16x128xf32>
    %4 = tpu.matmul %1, %2, %cst {dimension_numbers = #tpu.dot_dimension_numbers<[1], [0], [0], [1], [0, 0, 1, 1], [], []>} : vector<16x256xbf16>, vector<256x128xbf16>, vector<16x128xf32> -> vector<16x128xf32>
    %5 = vector.broadcast %3 : vector<1x128xf32> to vector<16x128xf32>
    %6 = arith.addf %4, %5 : vector<16x128xf32>
    %cst_5 = arith.constant 0.000000e+00 : f32
    %7 = vector.broadcast %cst_5 : f32 to vector<16x128xf32>
    %8 = arith.maximumf %6, %7 : vector<16x128xf32>
    %9 = arith.truncf %8 : vector<16x128xf32> to vector<16x128xbf16>
    %c0_6 = arith.constant 0 : index
    %c0_7 = arith.constant 0 : index
    %10 = vector.load %arg4[%c0_6, %c0_7] : memref<128x128xbf16, #tpu.memory_space<vmem>>, vector<128x128xbf16>
    %c0_8 = arith.constant 0 : index
    %c0_9 = arith.constant 0 : index
    %11 = vector.load %arg5[%c0_8, %c0_9] : memref<1x128xf32, #tpu.memory_space<vmem>>, vector<1x128xf32>
    %cst_10 = arith.constant dense<0.000000e+00> : vector<16x128xf32>
    %12 = tpu.matmul %9, %10, %cst_10 {dimension_numbers = #tpu.dot_dimension_numbers<[1], [0], [0], [1], [0, 0, 1, 1], [], []>} : vector<16x128xbf16>, vector<128x128xbf16>, vector<16x128xf32> -> vector<16x128xf32>
    %13 = vector.broadcast %11 : vector<1x128xf32> to vector<16x128xf32>
    %14 = arith.addf %12, %13 : vector<16x128xf32>
    %cst_11 = arith.constant 0.000000e+00 : f32
    %15 = vector.broadcast %cst_11 : f32 to vector<16x128xf32>
    %16 = arith.maximumf %14, %15 : vector<16x128xf32>
    %17 = arith.truncf %16 : vector<16x128xf32> to vector<16x128xbf16>
    %c0_12 = arith.constant 0 : index
    %c0_13 = arith.constant 0 : index
    %18 = vector.load %arg6[%c0_12, %c0_13] : memref<128x128xbf16, #tpu.memory_space<vmem>>, vector<128x128xbf16>
    %c0_14 = arith.constant 0 : index
    %c0_15 = arith.constant 0 : index
    %19 = vector.load %arg7[%c0_14, %c0_15] : memref<1x128xf32, #tpu.memory_space<vmem>>, vector<1x128xf32>
    %cst_16 = arith.constant dense<0.000000e+00> : vector<16x128xf32>
    %20 = tpu.matmul %17, %18, %cst_16 {dimension_numbers = #tpu.dot_dimension_numbers<[1], [0], [0], [1], [0, 0, 1, 1], [], []>} : vector<16x128xbf16>, vector<128x128xbf16>, vector<16x128xf32> -> vector<16x128xf32>
    %21 = vector.broadcast %19 : vector<1x128xf32> to vector<16x128xf32>
    %22 = arith.addf %20, %21 : vector<16x128xf32>
    %cst_17 = arith.constant 0.000000e+00 : f32
    %23 = vector.broadcast %cst_17 : f32 to vector<16x128xf32>
    %24 = arith.maximumf %22, %23 : vector<16x128xf32>
    %25 = arith.truncf %24 : vector<16x128xf32> to vector<16x128xbf16>
    %c0_18 = arith.constant 0 : index
    %c0_19 = arith.constant 0 : index
    %26 = vector.load %arg8[%c0_18, %c0_19] : memref<128x128xbf16, #tpu.memory_space<vmem>>, vector<128x128xbf16>
    %c0_20 = arith.constant 0 : index
    %c0_21 = arith.constant 0 : index
    %27 = vector.load %arg9[%c0_20, %c0_21] : memref<1x128xf32, #tpu.memory_space<vmem>>, vector<1x128xf32>
    %cst_22 = arith.constant dense<0.000000e+00> : vector<16x128xf32>
    %28 = tpu.matmul %25, %26, %cst_22 {dimension_numbers = #tpu.dot_dimension_numbers<[1], [0], [0], [1], [0, 0, 1, 1], [], []>} : vector<16x128xbf16>, vector<128x128xbf16>, vector<16x128xf32> -> vector<16x128xf32>
    %29 = vector.broadcast %27 : vector<1x128xf32> to vector<16x128xf32>
    %30 = arith.addf %28, %29 : vector<16x128xf32>
    %cst_23 = arith.constant 0.000000e+00 : f32
    %31 = vector.broadcast %cst_23 : f32 to vector<16x128xf32>
    %32 = arith.maximumf %30, %31 : vector<16x128xf32>
    %33 = arith.truncf %32 : vector<16x128xf32> to vector<16x128xbf16>
    %c0_24 = arith.constant 0 : index
    %c0_25 = arith.constant 0 : index
    %34 = vector.load %arg10[%c0_24, %c0_25] : memref<128x128xbf16, #tpu.memory_space<vmem>>, vector<128x128xbf16>
    %c0_26 = arith.constant 0 : index
    %c0_27 = arith.constant 0 : index
    %35 = vector.load %arg11[%c0_26, %c0_27] : memref<1x128xf32, #tpu.memory_space<vmem>>, vector<1x128xf32>
    %cst_28 = arith.constant dense<0.000000e+00> : vector<16x128xf32>
    %36 = tpu.matmul %33, %34, %cst_28 {dimension_numbers = #tpu.dot_dimension_numbers<[1], [0], [0], [1], [0, 0, 1, 1], [], []>} : vector<16x128xbf16>, vector<128x128xbf16>, vector<16x128xf32> -> vector<16x128xf32>
    %37 = vector.broadcast %35 : vector<1x128xf32> to vector<16x128xf32>
    %38 = arith.addf %36, %37 : vector<16x128xf32>
    %cst_29 = arith.constant 0.000000e+00 : f32
    %39 = vector.broadcast %cst_29 : f32 to vector<16x128xf32>
    %40 = arith.maximumf %38, %39 : vector<16x128xf32>
    %41 = arith.truncf %40 : vector<16x128xf32> to vector<16x128xbf16>
    %c0_30 = arith.constant 0 : index
    %c0_31 = arith.constant 0 : index
    %42 = vector.load %arg12[%c0_30, %c0_31] : memref<128x256xbf16, #tpu.memory_space<vmem>>, vector<128x256xbf16>
    %c0_32 = arith.constant 0 : index
    %c0_33 = arith.constant 0 : index
    %43 = vector.load %arg13[%c0_32, %c0_33] : memref<1x256xf32, #tpu.memory_space<vmem>>, vector<1x256xf32>
    %cst_34 = arith.constant dense<0.000000e+00> : vector<16x256xf32>
    %44 = tpu.matmul %41, %42, %cst_34 {dimension_numbers = #tpu.dot_dimension_numbers<[1], [0], [0], [1], [0, 0, 1, 1], [], []>} : vector<16x128xbf16>, vector<128x256xbf16>, vector<16x256xf32> -> vector<16x256xf32>
    %45 = vector.broadcast %43 : vector<1x256xf32> to vector<16x256xf32>
    %46 = arith.addf %44, %45 : vector<16x256xf32>
    %c0_35 = arith.constant 0 : index
    %c0_36 = arith.constant 0 : index
    %47 = vector.load %arg14[%c0_35, %c0_36] : memref<16x256xf32, #tpu.memory_space<vmem>>, vector<16x256xf32>
    tpu.vector_store %arg14[%c0_35, %c0_36], %46 {strides = array<i32>} : memref<16x256xf32, #tpu.memory_space<vmem>>, vector<16x256xf32>,
    return
  }
  func.func @transform_0(%arg0: i32) -> (i32, i32) {
    %c0_i32 = arith.constant 0 : i32
    %c0_i32_0 = arith.constant 0 : i32
    return %arg0, %c0_i32 : i32, i32
  }
  func.func @transform_1(%arg0: i32) -> (i32, i32) {
    %c0_i32 = arith.constant 0 : i32
    %c0_i32_0 = arith.constant 0 : i32
    %c0_i32_1 = arith.constant 0 : i32
    return %c0_i32, %c0_i32_0 : i32, i32
  }
  func.func @transform_2(%arg0: i32) -> (i32, i32) {
    %c0_i32 = arith.constant 0 : i32
    %c0_i32_0 = arith.constant 0 : i32
    %c0_i32_1 = arith.constant 0 : i32
    return %c0_i32, %c0_i32_0 : i32, i32
  }
  func.func @transform_3(%arg0: i32) -> (i32, i32) {
    %c0_i32 = arith.constant 0 : i32
    %c0_i32_0 = arith.constant 0 : i32
    %c0_i32_1 = arith.constant 0 : i32
    return %c0_i32, %c0_i32_0 : i32, i32
  }
  func.func @transform_4(%arg0: i32) -> (i32, i32) {
    %c0_i32 = arith.constant 0 : i32
    %c0_i32_0 = arith.constant 0 : i32
    %c0_i32_1 = arith.constant 0 : i32
    return %c0_i32, %c0_i32_0 : i32, i32
  }
  func.func @transform_5(%arg0: i32) -> (i32, i32) {
    %c0_i32 = arith.constant 0 : i32
    %c0_i32_0 = arith.constant 0 : i32
    %c0_i32_1 = arith.constant 0 : i32
    return %c0_i32, %c0_i32_0 : i32, i32
  }
  func.func @transform_6(%arg0: i32) -> (i32, i32) {
    %c0_i32 = arith.constant 0 : i32
    %c0_i32_0 = arith.constant 0 : i32
    %c0_i32_1 = arith.constant 0 : i32
    return %c0_i32, %c0_i32_0 : i32, i32
  }
  func.func @transform_7(%arg0: i32) -> (i32, i32) {
    %c0_i32 = arith.constant 0 : i32
    %c0_i32_0 = arith.constant 0 : i32
    %c0_i32_1 = arith.constant 0 : i32
    return %c0_i32, %c0_i32_0 : i32, i32
  }
  func.func @transform_8(%arg0: i32) -> (i32, i32) {
    %c0_i32 = arith.constant 0 : i32
    %c0_i32_0 = arith.constant 0 : i32
    %c0_i32_1 = arith.constant 0 : i32
    return %c0_i32, %c0_i32_0 : i32, i32
  }
  func.func @transform_9(%arg0: i32) -> (i32, i32) {
    %c0_i32 = arith.constant 0 : i32
    %c0_i32_0 = arith.constant 0 : i32
    %c0_i32_1 = arith.constant 0 : i32
    return %c0_i32, %c0_i32_0 : i32, i32
  }
  func.func @transform_10(%arg0: i32) -> (i32, i32) {
    %c0_i32 = arith.constant 0 : i32
    %c0_i32_0 = arith.constant 0 : i32
    %c0_i32_1 = arith.constant 0 : i32
    return %c0_i32, %c0_i32_0 : i32, i32
  }
  func.func @transform_11(%arg0: i32) -> (i32, i32) {
    %c0_i32 = arith.constant 0 : i32
    %c0_i32_0 = arith.constant 0 : i32
    %c0_i32_1 = arith.constant 0 : i32
    return %c0_i32, %c0_i32_0 : i32, i32
  }
  func.func @transform_12(%arg0: i32) -> (i32, i32) {
    %c0_i32 = arith.constant 0 : i32
    %c0_i32_0 = arith.constant 0 : i32
    %c0_i32_1 = arith.constant 0 : i32
    return %c0_i32, %c0_i32_0 : i32, i32
  }
  func.func @transform_13(%arg0: i32) -> (i32, i32) {
    %c0_i32 = arith.constant 0 : i32
    %c0_i32_0 = arith.constant 0 : i32
    return %arg0, %c0_i32 : i32, i32
  }
}

module attributes {stable_mosaic.version = 11 : i64} {
  func.func @kernel(%arg0: i32, %arg1: memref<16x256xf32, #tpu.memory_space<vmem>>, %arg2: memref<256x128xbf16, #tpu.memory_space<vmem>>, %arg3: memref<1x128xf32, #tpu.memory_space<vmem>>, %arg4: memref<128x128xbf16, #tpu.memory_space<vmem>>, %arg5: memref<1x128xf32, #tpu.memory_space<vmem>>, %arg6: memref<128x128xbf16, #tpu.memory_space<vmem>>, %arg7: memref<1x128xf32, #tpu.memory_space<vmem>>, %arg8: memref<128x128xbf16, #tpu.memory_space<vmem>>, %arg9: memref<1x128xf32, #tpu.memory_space<vmem>>, %arg10: memref<128x128xbf16, #tpu.memory_space<vmem>>, %arg11: memref<1x128xf32, #tpu.memory_space<vmem>>, %arg12: memref<128x256xbf16, #tpu.memory_space<vmem>>, %arg13: memref<1x256xf32, #tpu.memory_space<vmem>>, %arg14: memref<16x256xf32, #tpu.memory_space<vmem>>) attributes {dimension_semantics = [#tpu.dimension_semantics<parallel>], iteration_bounds = array<i64: 1>, scalar_prefetch = 0 : i64, scratch_operands = 0 : i64, tpu.core_type = #tpu.core_type<tc>, window_params = [{transform_indices = @transform_0, window_bounds = array<i64: 16, 256>}, {pipeline_mode = #tpu.pipeline_mode<synchronous>, transform_indices = @transform_1, window_bounds = array<i64: 256, 128>}, {pipeline_mode = #tpu.pipeline_mode<synchronous>, transform_indices = @transform_2, window_bounds = array<i64: 1, 128>}, {pipeline_mode = #tpu.pipeline_mode<synchronous>, transform_indices = @transform_3, window_bounds = array<i64: 128, 128>}, {pipeline_mode = #tpu.pipeline_mode<synchronous>, transform_indices = @transform_4, window_bounds = array<i64: 1, 128>}, {pipeline_mode = #tpu.pipeline_mode<synchronous>, transform_indices = @transform_5, window_bounds = array<i64: 128, 128>}, {pipeline_mode = #tpu.pipeline_mode<synchronous>, transform_indices = @transform_6, window_bounds = array<i64: 1, 128>}, {pipeline_mode = #tpu.pipeline_mode<synchronous>, transform_indices = @transform_7, window_bounds = array<i64: 128, 128>}, {pipeline_mode = #tpu.pipeline_mode<synchronous>, transform_indices = @transform_8, window_bounds = array<i64: 1, 128>}, {pipeline_mode = #tpu.pipeline_mode<synchronous>, transform_indices = @transform_9, window_bounds = array<i64: 128, 128>}, {pipeline_mode = #tpu.pipeline_mode<synchronous>, transform_indices = @transform_10, window_bounds = array<i64: 1, 128>}, {pipeline_mode = #tpu.pipeline_mode<synchronous>, transform_indices = @transform_11, window_bounds = array<i64: 128, 256>}, {pipeline_mode = #tpu.pipeline_mode<synchronous>, transform_indices = @transform_12, window_bounds = array<i64: 1, 256>}, {transform_indices = @transform_13, window_bounds = array<i64: 16, 256>}]} {
    %c0 = arith.constant 0 : index
    %c0_0 = arith.constant 0 : index
    %0 = vector.load %arg1[%c0, %c0_0] : memref<16x256xf32, #tpu.memory_space<vmem>>, vector<16x256xf32>
    %1 = arith.truncf %0 : vector<16x256xf32> to vector<16x256xbf16>
    %c0_1 = arith.constant 0 : index
    %c0_2 = arith.constant 0 : index
    %2 = vector.load %arg2[%c0_1, %c0_2] : memref<256x128xbf16, #tpu.memory_space<vmem>>, vector<256x128xbf16>
    %c0_3 = arith.constant 0 : index
    %c0_4 = arith.constant 0 : index
    %3 = vector.load %arg3[%c0_3, %c0_4] : memref<1x128xf32, #tpu.memory_space<vmem>>, vector<1x128xf32>
    %cst = arith.constant dense<0.000000e+00> : vector<16x128xf32>
    %4 = tpu.matmul %1, %2, %cst {dimension_numbers = #tpu.dot_dimension_numbers<[1], [0], [0], [1], [0, 0, 1, 1], [], []>} : vector<16x256xbf16>, vector<256x128xbf16>, vector<16x128xf32> -> vector<16x128xf32>
    %5 = vector.broadcast %3 : vector<1x128xf32> to vector<16x128xf32>
    %6 = arith.addf %4, %5 : vector<16x128xf32>
    %cst_5 = arith.constant 0.000000e+00 : f32
    %7 = vector.broadcast %cst_5 : f32 to vector<16x128xf32>
    %8 = arith.maximumf %6, %7 : vector<16x128xf32>
    %9 = arith.truncf %8 : vector<16x128xf32> to vector<16x128xbf16>
    %c0_6 = arith.constant 0 : index
    %c0_7 = arith.constant 0 : index
    %10 = vector.load %arg4[%c0_6, %c0_7] : memref<128x128xbf16, #tpu.memory_space<vmem>>, vector<128x128xbf16>
    %c0_8 = arith.constant 0 : index
    %c0_9 = arith.constant 0 : index
    %11 = vector.load %arg5[%c0_8, %c0_9] : memref<1x128xf32, #tpu.memory_space<vmem>>, vector<1x128xf32>
    %cst_10 = arith.constant dense<0.000000e+00> : vector<16x128xf32>
    %12 = tpu.matmul %9, %10, %cst_10 {dimension_numbers = #tpu.dot_dimension_numbers<[1], [0], [0], [1], [0, 0, 1, 1], [], []>} : vector<16x128xbf16>, vector<128x128xbf16>, vector<16x128xf32> -> vector<16x128xf32>
    %13 = vector.broadcast %11 : vector<1x128xf32> to vector<16x128xf32>
    %14 = arith.addf %12, %13 : vector<16x128xf32>
    %cst_11 = arith.constant 0.000000e+00 : f32
    %15 = vector.broadcast %cst_11 : f32 to vector<16x128xf32>
    %16 = arith.maximumf %14, %15 : vector<16x128xf32>
    %17 = arith.truncf %16 : vector<16x128xf32> to vector<16x128xbf16>
    %c0_12 = arith.constant 0 : index
    %c0_13 = arith.constant 0 : index
    %18 = vector.load %arg6[%c0_12, %c0_13] : memref<128x128xbf16, #tpu.memory_space<vmem>>, vector<128x128xbf16>
    %c0_14 = arith.constant 0 : index
    %c0_15 = arith.constant 0 : index
    %19 = vector.load %arg7[%c0_14, %c0_15] : memref<1x128xf32, #tpu.memory_space<vmem>>, vector<1x128xf32>
    %cst_16 = arith.constant dense<0.000000e+00> : vector<16x128xf32>
    %20 = tpu.matmul %17, %18, %cst_16 {dimension_numbers = #tpu.dot_dimension_numbers<[1], [0], [0], [1], [0, 0, 1, 1], [], []>} : vector<16x128xbf16>, vector<128x128xbf16>, vector<16x128xf32> -> vector<16x128xf32>
    %21 = vector.broadcast %19 : vector<1x128xf32> to vector<16x128xf32>
    %22 = arith.addf %20, %21 : vector<16x128xf32>
    %cst_17 = arith.constant 0.000000e+00 : f32
    %23 = vector.broadcast %cst_17 : f32 to vector<16x128xf32>
    %24 = arith.maximumf %22, %23 : vector<16x128xf32>
    %25 = arith.truncf %24 : vector<16x128xf32> to vector<16x128xbf16>
    %c0_18 = arith.constant 0 : index
    %c0_19 = arith.constant 0 : index
    %26 = vector.load %arg8[%c0_18, %c0_19] : memref<128x128xbf16, #tpu.memory_space<vmem>>, vector<128x128xbf16>
    %c0_20 = arith.constant 0 : index
    %c0_21 = arith.constant 0 : index
    %27 = vector.load %arg9[%c0_20, %c0_21] : memref<1x128xf32, #tpu.memory_space<vmem>>, vector<1x128xf32>
    %cst_22 = arith.constant dense<0.000000e+00> : vector<16x128xf32>
    %28 = tpu.matmul %25, %26, %cst_22 {dimension_numbers = #tpu.dot_dimension_numbers<[1], [0], [0], [1], [0, 0, 1, 1], [], []>} : vector<16x128xbf16>, vector<128x128xbf16>, vector<16x128xf32> -> vector<16x128xf32>
    %29 = vector.broadcast %27 : vector<1x128xf32> to vector<16x128xf32>
    %30 = arith.addf %28, %29 : vector<16x128xf32>
    %cst_23 = arith.constant 0.000000e+00 : f32
    %31 = vector.broadcast %cst_23 : f32 to vector<16x128xf32>
    %32 = arith.maximumf %30, %31 : vector<16x128xf32>
    %33 = arith.truncf %32 : vector<16x128xf32> to vector<16x128xbf16>
    %c0_24 = arith.constant 0 : index
    %c0_25 = arith.constant 0 : index
    %34 = vector.load %arg10[%c0_24, %c0_25] : memref<128x128xbf16, #tpu.memory_space<vmem>>, vector<128x128xbf16>
    %c0_26 = arith.constant 0 : index
    %c0_27 = arith.constant 0 : index
    %35 = vector.load %arg11[%c0_26, %c0_27] : memref<1x128xf32, #tpu.memory_space<vmem>>, vector<1x128xf32>
    %cst_28 = arith.constant dense<0.000000e+00> : vector<16x128xf32>
    %36 = tpu.matmul %33, %34, %cst_28 {dimension_numbers = #tpu.dot_dimension_numbers<[1], [0], [0], [1], [0, 0, 1, 1], [], []>} : vector<16x128xbf16>, vector<128x128xbf16>, vector<16x128xf32> -> vector<16x128xf32>
    %37 = vector.broadcast %35 : vector<1x128xf32> to vector<16x128xf32>
    %38 = arith.addf %36, %37 : vector<16x128xf32>
    %cst_29 = arith.constant 0.000000e+00 : f32
    %39 = vector.broadcast %cst_29 : f32 to vector<16x128xf32>
    %40 = arith.maximumf %38, %39 : vector<16x128xf32>
    %41 = arith.truncf %40 : vector<16x128xf32> to vector<16x128xbf16>
    %c0_30 = arith.constant 0 : index
    %c0_31 = arith.constant 0 : index
    %42 = vector.load %arg12[%c0_30, %c0_31] : memref<128x256xbf16, #tpu.memory_space<vmem>>, vector<128x256xbf16>
    %c0_32 = arith.constant 0 : index
    %c0_33 = arith.constant 0 : index
    %43 = vector.load %arg13[%c0_32, %c0_33] : memref<1x256xf32, #tpu.memory_space<vmem>>, vector<1x256xf32>
    %cst_34 = arith.constant dense<0.000000e+00> : vector<16x256xf32>
    %44 = tpu.matmul %41, %42, %cst_34 {dimension_numbers = #tpu.dot_dimension_numbers<[1], [0], [0], [1], [0, 0, 1, 1], [], []>} : vector<16x128xbf16>, vector<128x256xbf16>, vector<16x256xf32> -> vector<16x256xf32>
    %45 = vector.broadcast %43 : vector<1x256xf32> to vector<16x256xf32>
    %46 = arith.addf %44, %45 : vector<16x256xf32>
    %c0_35 = arith.constant 0 : index
    %c0_36 = arith.constant 0 : index
    %47 = vector.load %arg14[%c0_35, %c0_36] : memref<16x256xf32, #tpu.memory_space<vmem>>, vector<16x256xf32>
    tpu.vector_store %arg14[%c0_35, %c0_36], %46 {strides = array<i32>} : memref<16x256xf32, #tpu.memory_space<vmem>>, vector<16x256xf32>,
    return
  }
  func.func @transform_0(%arg0: i32) -> (i32, i32) {
    %c0_i32 = arith.constant 0 : i32
    %c0_i32_0 = arith.constant 0 : i32
    return %arg0, %c0_i32 : i32, i32
  }
  func.func @transform_1(%arg0: i32) -> (i32, i32) {
    %c0_i32 = arith.constant 0 : i32
    %c0_i32_0 = arith.constant 0 : i32
    %c0_i32_1 = arith.constant 0 : i32
    return %c0_i32, %c0_i32_0 : i32, i32
  }
  func.func @transform_2(%arg0: i32) -> (i32, i32) {
    %c0_i32 = arith.constant 0 : i32
    %c0_i32_0 = arith.constant 0 : i32
    %c0_i32_1 = arith.constant 0 : i32
    return %c0_i32, %c0_i32_0 : i32, i32
  }
  func.func @transform_3(%arg0: i32) -> (i32, i32) {
    %c0_i32 = arith.constant 0 : i32
    %c0_i32_0 = arith.constant 0 : i32
    %c0_i32_1 = arith.constant 0 : i32
    return %c0_i32, %c0_i32_0 : i32, i32
  }
  func.func @transform_4(%arg0: i32) -> (i32, i32) {
    %c0_i32 = arith.constant 0 : i32
    %c0_i32_0 = arith.constant 0 : i32
    %c0_i32_1 = arith.constant 0 : i32
    return %c0_i32, %c0_i32_0 : i32, i32
  }
  func.func @transform_5(%arg0: i32) -> (i32, i32) {
    %c0_i32 = arith.constant 0 : i32
    %c0_i32_0 = arith.constant 0 : i32
    %c0_i32_1 = arith.constant 0 : i32
    return %c0_i32, %c0_i32_0 : i32, i32
  }
  func.func @transform_6(%arg0: i32) -> (i32, i32) {
    %c0_i32 = arith.constant 0 : i32
    %c0_i32_0 = arith.constant 0 : i32
    %c0_i32_1 = arith.constant 0 : i32
    return %c0_i32, %c0_i32_0 : i32, i32
  }
  func.func @transform_7(%arg0: i32) -> (i32, i32) {
    %c0_i32 = arith.constant 0 : i32
    %c0_i32_0 = arith.constant 0 : i32
    %c0_i32_1 = arith.constant 0 : i32
    return %c0_i32, %c0_i32_0 : i32, i32
  }
  func.func @transform_8(%arg0: i32) -> (i32, i32) {
    %c0_i32 = arith.constant 0 : i32
    %c0_i32_0 = arith.constant 0 : i32
    %c0_i32_1 = arith.constant 0 : i32
    return %c0_i32, %c0_i32_0 : i32, i32
  }
  func.func @transform_9(%arg0: i32) -> (i32, i32) {
    %c0_i32 = arith.constant 0 : i32
    %c0_i32_0 = arith.constant 0 : i32
    %c0_i32_1 = arith.constant 0 : i32
    return %c0_i32, %c0_i32_0 : i32, i32
  }
  func.func @transform_10(%arg0: i32) -> (i32, i32) {
    %c0_i32 = arith.constant 0 : i32
    %c0_i32_0 = arith.constant 0 : i32
    %c0_i32_1 = arith.constant 0 : i32
    return %c0_i32, %c0_i32_0 : i32, i32
  }
  func.func @transform_11(%arg0: i32) -> (i32, i32) {
    %c0_i32 = arith.constant 0 : i32
    %c0_i32_0 = arith.constant 0 : i32
    %c0_i32_1 = arith.constant 0 : i32
    return %c0_i32, %c0_i32_0 : i32, i32
  }
  func.func @transform_12(%arg0: i32) -> (i32, i32) {
    %c0_i32 = arith.constant 0 : i32
    %c0_i32_0 = arith.constant 0 : i32
    %c0_i32_1 = arith.constant 0 : i32
    return %c0_i32, %c0_i32_0 : i32, i32
  }
  func.func @transform_13(%arg0: i32) -> (i32, i32) {
    %c0_i32 = arith.constant 0 : i32
    %c0_i32_0 = arith.constant 0 : i32
    return %arg0, %c0_i32 : i32, i32
  }
}

</mosaic_0001>

<bundles_post_ra>
// kernel: tpu_custom_call.1
= control target key start
LH: loop header
LB: loop body
LE: loop exit
PB: predicated region body
PF: predicated region fallthrough
CT: control target
= control target key end

     0   :  { %18 = vsyncpa [#allocation3], 0  ;;  %s1712_s0 = inlined_call_operand.hbm [shape: f32[16,256], index: 0, kind: input, shape index: {}]   ;;  %s1713_s1 = inlined_call_operand.hbm [shape: bf16[256,128], index: 1, kind: input, shape index: {}]   ;;  %s1714_s2 = inlined_call_operand.vmem [shape: f32[1,128], index: 2, kind: input, shape index: {}]   ;;  %s1715_s3 = inlined_call_operand.hbm [shape: bf16[128,128], index: 3, kind: input, shape index: {}]   ;;  %s1716_s4 = inlined_call_operand.vmem [shape: f32[1,128], index: 4, kind: input, shape index: {}]   ;;  %s1717_s5 = inlined_call_operand.hbm [shape: bf16[128,128], index: 5, kind: input, shape index: {}]   ;;  %s1718_s6 = inlined_call_operand.vmem [shape: f32[1,128], index: 6, kind: input, shape index: {}]   ;;  %s1719_s7 = inlined_call_operand.hbm [shape: bf16[128,128], index: 7, kind: input, shape index: {}]   ;;  %s1720_s8 = inlined_call_operand.vmem [shape: f32[1,128], index: 8, kind: input, shape index: {}]   ;;  %s1721_s9 = inlined_call_operand.hbm [shape: bf16[128,128], index: 9, kind: input, shape index: {}]   ;;  %s1722_s10 = inlined_call_operand.vmem [shape: f32[1,128], index: 10, kind: input, shape index: {}]   ;;  %s1723_s11 = inlined_call_operand.hbm [shape: bf16[128,256], index: 11, kind: input, shape index: {}]   ;;  %s1724_s12 = inlined_call_operand.vmem [shape: f32[1,256], index: 12, kind: input, shape index: {}]   ;;  %s1725_s13 = inlined_call_operand.hbm [shape: f32[16,256], index: 13, kind: output, shape index: {}]  }
   0x1   :  { %19 = vsyncpa [#allocation6], 0 }
   0x2   :  { %20 = vsyncpa [#allocation9], 0 }
   0x3   :  { %21 = vsyncpa [#allocation12], 0 }
   0x4   :  { %22 = vsyncpa [#allocation4], 0  ;;  %s1443_s25 = smov [#allocation5]   ;;  %s1257_s29 = scalar_lea.hbm %s1713_s1, 2048 }
   0x5   :  { %s40_s26 = sshll.u32 %s1443_s25, 4  ;;  %p1258_p0 = scmp.ne.s32.totalorder %s1713_s1, %s1257_s29  ;;  %s41_s26 = int_to_ptr.vmem [resolvable:$true] %s40_s26 }
   0x6   :  { %p1261_p1 = scmp.lt.u32.totalorder %s1257_s29, %s1713_s1 }
   0x8   :  { %p1263_p2 = pnand %p1261_p1, %p1258_p0 }
   0xa   :  { %1266 = shalt.err (!%p1263_p2)
}
   0xb   :  { %s1267_s17 = scalar_lea.vmem %s41_s26, 2048  ;;  %p1272_p4 = scmp.lt.s32.totalorder %s41_s26, %s41_s26 }
   0xc   :  { %p1268_p3 = scmp.ne.s32.totalorder %s41_s26, %s1267_s17  ;;  %p1273_p5 = scmp.lt.s32.totalorder %s1267_s17, %s1267_s17 }
   0xe   :  { %p1274_p6 = por %p1273_p5, %p1272_p4 }
  0x10   :  { %p1275_p7 = pnand %p1274_p6, %p1268_p3 }
  0x12   :  { %1278 = shalt.err (!%p1275_p7)
}
  0x13   :  { %s1444_s18 = smov 64   ;;  %s1445_s19 = smov 4  }
  0x14   :  { %46 = dma.hbm_to_vmem [thread:$0]  %s1713_s1, 2048, %s41_s26, [#allocation6], %s1444_s18, %s1444_s18, %s1445_s19  }
  0x15   :  { %s1446_s22 = smov [#allocation8]   ;;  %s1447_s24 = smov [#allocation11]  }
  0x16   :  { %s68_s23 = sshll.u32 %s1446_s22, 4  ;;  %s96_s25 = sshll.u32 %s1447_s24, 4  ;;  %s69_s23 = int_to_ptr.vmem [resolvable:$true] %s68_s23  ;;  %s97_s25 = int_to_ptr.vmem [resolvable:$true] %s96_s25 }
  0x17   :  { %s1279_s29 = scalar_lea.hbm %s1717_s5, 1024 }
  0x18   :  { %p1280_p8 = scmp.ne.s32.totalorder %s1717_s5, %s1279_s29  ;;  %p1283_p9 = scmp.lt.u32.totalorder %s1279_s29, %s1717_s5 }
  0x1a   :  { %p1285_p10 = pnand %p1283_p9, %p1280_p8 }
  0x1c   :  { %1288 = shalt.err (!%p1285_p10)
}
  0x1d   :  { %s1289_s1 = scalar_lea.vmem %s69_s23, 1024  ;;  %p1294_p12 = scmp.lt.s32.totalorder %s69_s23, %s69_s23 }
  0x1e   :  { %p1290_p11 = scmp.ne.s32.totalorder %s69_s23, %s1289_s1  ;;  %p1295_p13 = scmp.lt.s32.totalorder %s1289_s1, %s1289_s1 }
  0x20   :  { %p1296_p0 = por %p1295_p13, %p1294_p12 }
  0x22   :  { %p1297_p1 = pnand %p1296_p0, %p1290_p11 }
  0x24   :  { %1300 = shalt.err (!%p1297_p1)
}
  0x25   :  { %74 = dma.hbm_to_vmem [thread:$0]  %s1717_s5, 1024, %s69_s23, [#allocation9], %s1444_s18, %s1444_s18, %s1445_s19  }
  0x26   :  { %s1301_s22 = scalar_lea.hbm %s1721_s9, 1024 }
  0x27   :  { %p1302_p2 = scmp.ne.s32.totalorder %s1721_s9, %s1301_s22  ;;  %p1305_p3 = scmp.lt.u32.totalorder %s1301_s22, %s1721_s9 }
  0x29   :  { %p1307_p4 = pnand %p1305_p3, %p1302_p2 }
  0x2b   :  { %1310 = shalt.err (!%p1307_p4)
}
  0x2c   :  { %s1311_s30 = scalar_lea.vmem %s97_s25, 1024  ;;  %p1316_p6 = scmp.lt.s32.totalorder %s97_s25, %s97_s25 }
  0x2d   :  { %p1312_p5 = scmp.ne.s32.totalorder %s97_s25, %s1311_s30  ;;  %p1317_p7 = scmp.lt.s32.totalorder %s1311_s30, %s1311_s30 }
  0x2f   :  { %p1318_p8 = por %p1317_p7, %p1316_p6 }
  0x31   :  { %p1319_p9 = pnand %p1318_p8, %p1312_p5 }
  0x33   :  { %1322 = shalt.err (!%p1319_p9)
}
  0x34   :  { %102 = dma.hbm_to_vmem [thread:$0]  %s1721_s9, 1024, %s97_s25, [#allocation12], %s1444_s18, %s1444_s18, %s1445_s19  }
  0x35   :  { %s1448_s14 = smov [#allocation2]   ;;  %s1323_s26 = scalar_lea.hbm %s1712_s0, 512 }
  0x36   :  { %s28_s15 = sshll.u32 %s1448_s14, 4  ;;  %p1324_p10 = scmp.ne.s32.totalorder %s1712_s0, %s1323_s26  ;;  %s29_s15 = int_to_ptr.vmem [resolvable:$true] %s28_s15 }
  0x37   :  { %p1327_p11 = scmp.lt.u32.totalorder %s1323_s26, %s1712_s0 }
  0x39   :  { %p1329_p12 = pnand %p1327_p11, %p1324_p10 }
  0x3b   :  { %1332 = shalt.err (!%p1329_p12)
}
  0x3c   :  { %s1333_s24 = scalar_lea.vmem %s29_s15, 512  ;;  %p1338_p0 = scmp.lt.s32.totalorder %s29_s15, %s29_s15 }
  0x3d   :  { %p1334_p13 = scmp.ne.s32.totalorder %s29_s15, %s1333_s24  ;;  %p1339_p1 = scmp.lt.s32.totalorder %s1333_s24, %s1333_s24 }
  0x3f   :  { %p1340_p2 = por %p1339_p1, %p1338_p0 }
  0x41   :  { %p1341_p3 = pnand %p1340_p2, %p1334_p13 }
  0x43   :  { %1344 = shalt.err (!%p1341_p3)
}
  0x44   :  { %s1449_s9 = smov 256   ;;  %s1450_s25 = smov 16  }
  0x45   :  { %34 = dma.hbm_to_vmem [thread:$0]  %s1712_s0, 512, %s29_s15, [#allocation3], %s1449_s9, %s1449_s9, %s1450_s25  }
  0x46   :  { %s1451_s29 = smov [#allocation7]   ;;  %s1452_s5 = smov [#allocation10]  }
  0x47   :  { %s54_s30 = sshll.u32 %s1451_s29, 4  ;;  %s82_s23 = sshll.u32 %s1452_s5, 4  ;;  %s55_s30 = int_to_ptr.vmem [resolvable:$true] %s54_s30  ;;  %s1590_s23 = int_to_ptr.vmem [resolvable:$true] %s82_s23 }
  0x48   :  { %s1345_s1 = scalar_lea.hbm %s1715_s3, 1024 }
  0x49   :  { %p1346_p4 = scmp.ne.s32.totalorder %s1715_s3, %s1345_s1  ;;  %p1349_p5 = scmp.lt.u32.totalorder %s1345_s1, %s1715_s3 }
  0x4b   :  { %p1351_p6 = pnand %p1349_p5, %p1346_p4 }
  0x4d   :  { %1354 = shalt.err (!%p1351_p6)
}
  0x4e   :  { %s1355_s0 = scalar_lea.vmem %s55_s30, 1024  ;;  %p1360_p8 = scmp.lt.s32.totalorder %s55_s30, %s55_s30 }
  0x4f   :  { %p1356_p7 = scmp.ne.s32.totalorder %s55_s30, %s1355_s0  ;;  %p1361_p9 = scmp.lt.s32.totalorder %s1355_s0, %s1355_s0 }
  0x51   :  { %p1362_p10 = por %p1361_p9, %p1360_p8 }
  0x53   :  { %p1363_p11 = pnand %p1362_p10, %p1356_p7 }
  0x55   :  { %1366 = shalt.err (!%p1363_p11)
}
  0x56   :  { %60 = dma.hbm_to_vmem [thread:$0]  %s1715_s3, 1024, %s55_s30, [#allocation6], %s1444_s18, %s1444_s18, %s1445_s19  }
  0x57   :  { %s1367_s28 = scalar_lea.hbm %s1719_s7, 1024 }
  0x58   :  { %p1368_p12 = scmp.ne.s32.totalorder %s1719_s7, %s1367_s28  ;;  %p1371_p13 = scmp.lt.u32.totalorder %s1367_s28, %s1719_s7 }
  0x5a   :  { %p1373_p0 = pnand %p1371_p13, %p1368_p12 }
  0x5c   :  { %1376 = shalt.err (!%p1373_p0)
}
  0x5d   :  { %s1377_s1 = scalar_lea.vmem %s1590_s23, 1024  ;;  %p1382_p2 = scmp.lt.s32.totalorder %s1590_s23, %s1590_s23 }
  0x5e   :  { %p1378_p1 = scmp.ne.s32.totalorder %s1590_s23, %s1377_s1  ;;  %p1383_p3 = scmp.lt.s32.totalorder %s1377_s1, %s1377_s1 }
  0x60   :  { %p1384_p4 = por %p1383_p3, %p1382_p2 }
  0x62   :  { %p1385_p5 = pnand %p1384_p4, %p1378_p1 }
  0x64   :  { %1388 = shalt.err (!%p1385_p5)
}
  0x65   :  { %88 = dma.hbm_to_vmem [thread:$0]  %s1719_s7, 1024, %s1590_s23, [#allocation9], %s1444_s18, %s1444_s18, %s1445_s19  }
  0x66   :  { %s1453_s26 = smov [#allocation13]   ;;  %s1389_s0 = scalar_lea.hbm %s1723_s11, 2048 }
  0x67   :  { %s110_s17 = sshll.u32 %s1453_s26, 4  ;;  %p1390_p6 = scmp.ne.s32.totalorder %s1723_s11, %s1389_s0  ;;  %s111_s17 = int_to_ptr.vmem [resolvable:$true] %s110_s17 }
  0x68   :  { %p1393_p7 = scmp.lt.u32.totalorder %s1389_s0, %s1723_s11 }
  0x6a   :  { %p1395_p8 = pnand %p1393_p7, %p1390_p6 }
  0x6c   :  { %1398 = shalt.err (!%p1395_p8)
}
  0x6d   :  { %s1399_s28 = scalar_lea.vmem %s111_s17, 2048  ;;  %p1404_p10 = scmp.lt.s32.totalorder %s111_s17, %s111_s17 }
  0x6e   :  { %p1400_p9 = scmp.ne.s32.totalorder %s111_s17, %s1399_s28  ;;  %p1405_p11 = scmp.lt.s32.totalorder %s1399_s28, %s1399_s28 }
  0x70   :  { %p1406_p12 = por %p1405_p11, %p1404_p10 }
  0x72   :  { %p1407_p13 = pnand %p1406_p12, %p1400_p9 }
  0x74   :  { %1410 = shalt.err (!%p1407_p13)
}
  0x75   :  { %s1454_s7 = smov 128   ;;  %s1455_s18 = smov 8  }
  0x76   :  { %116 = dma.hbm_to_vmem [thread:$0]  %s1723_s11, 2048, %s111_s17, [#allocation12], %s1454_s7, %s1454_s7, %s1455_s18  }
  0x77   :  { %1433 = dma.done.wait [#allocation3], 512  }
  0x78   :  { %1434 = vsyncadd [#allocation3], 4294966784 }
  0x79   :  { %1435 = dma.done.wait [#allocation6], 3072  }
  0x7a   :  { %1436 = vsyncadd [#allocation6], 4294964224 }
  0x7b   :  { %1437 = dma.done.wait [#allocation9], 2048  }
  0x7c   :  { %1438 = vsyncadd [#allocation9], 4294965248 }
  0x7d   :  { %1439 = dma.done.wait [#allocation12], 3072  }
  0x7e   :  { %1440 = vsyncadd [#allocation12], 4294964224  ;;  %v1456_v0 = vmov 0.0   ;;  %v1185_v1 = vld [vmem:[#allocation5 + $0x40] sm:$0xff]   ;;  %v1187_v3 = vld [vmem:[#allocation5 + $0x48] sm:$0xff]   ;;  %vm1457_vm0 = vmmov 0  }
  0x7f   :  { %1088 = vmatprep.subr.bf16.mxu1 %v1456_v0  ;;  %v1186_v2 = vld [vmem:[#allocation5] sm:$0xff]   ;;  %1030 = vmatprep.subr.bf16.mxu0 %v1185_v1  ;;  %v1188_v4 = vld [vmem:[#allocation5 + $0x8] sm:$0xff]   ;;  %v1189_v5 = vld [vmem:[#allocation5 + $0x50] sm:$0xff]  }
  0x80   :  { %1031 = vmatpush3.bf16.msra.mxu0 %v1186_v2  ;;  %v1190_v6 = vld [vmem:[#allocation5 + $0x10] sm:$0xff]   ;;  %v1191_v7 = vld [vmem:[#allocation5 + $0x58] sm:$0xff]   ;;  %v1193_v9 = vld [vmem:[#allocation5 + $0x60] sm:$0xff]   ;;  %1104 = vmatprep.mubr.msk.bf16.mxu1 %vm1457_vm0, %v1456_v0 }
  0x81   :  { %1032 = vmatprep.subr.bf16.mxu0 %v1187_v3  ;;  %v1192_v8 = vld [vmem:[#allocation5 + $0x18] sm:$0xff]   ;;  %v1194_v10 = vld [vmem:[#allocation5 + $0x20] sm:$0xff]   ;;  %v1195_v11 = vld [vmem:[#allocation5 + $0x68] sm:$0xff]  }
  0x82   :  { %v142_v12 = vld [vmem:[#allocation2 + $0x8] sm:$0xff]  ;;  %v144_v13 = vld [vmem:[#allocation2 + $0x18] sm:$0xff]  ;;  %v1201_v16 = vld [vmem:[#allocation7] sm:$0xff]  }
  0x83   :  { %v1196_v14 = vld [vmem:[#allocation5 + $0x28] sm:$0xff]   ;;  %v146_v15 = vpack.c.bf16 %v144_v13, %v142_v12  ;;  %v1197_v17 = vld [vmem:[#allocation5 + $0x70] sm:$0xff]   ;;  %1089 = vmatpush3.bf16.msra.mxu1 %v1201_v16  ;;  %v1199_v20 = vld [vmem:[#allocation5 + $0x78] sm:$0xff]  }
  0x84   :  { %1033 = vmatpush3.bf16.msra.mxu0 %v1188_v4  ;;  %v1202_v18 = vld [vmem:[#allocation7 + $0x8] sm:$0xff]   ;;  %v1198_v19 = vld [vmem:[#allocation5 + $0x30] sm:$0xff]   ;;  %1090 = vmatprep.subr.bf16.mxu1 %v1456_v0  ;;  %v1200_v22 = vld [vmem:[#allocation5 + $0x38] sm:$0xff]  }
  0x85   :  { %1034 = vmatprep.subr.bf16.mxu0 %v1189_v5  ;;  %314 = vmatprep.mubr.bf16.mxu0 %v146_v15  ;;  %v1203_v21 = vld [vmem:[#allocation7 + $0x10] sm:$0xff]   ;;  %v141_v23 = vld [vmem:[#allocation2] sm:$0xff]  ;;  %v1204_v25 = vld [vmem:[#allocation7 + $0x18] sm:$0xff]  }
  0x86   :  { %v143_v24 = vld [vmem:[#allocation2 + $0x10] sm:$0xff]  ;;  %v1205_v27 = vld [vmem:[#allocation7 + $0x20] sm:$0xff]   ;;  %v1206_v28 = vld [vmem:[#allocation7 + $0x28] sm:$0xff]  }
  0x87   :  { %1091 = vmatpush3.bf16.msra.mxu1 %v1202_v18  ;;  %v145_v26 = vpack.c.bf16 %v143_v24, %v141_v23  ;;  %v1207_v29 = vld [vmem:[#allocation7 + $0x30] sm:$0xff]   ;;  %v1208_v30 = vld [vmem:[#allocation7 + $0x38] sm:$0xff]   ;;  %v1209_v31 = vld [vmem:[#allocation8] sm:$0xff]  }
  0x88   :  { %1035 = vmatpush3.bf16.msra.mxu0 %v1190_v6  ;;  %1092 = vmatprep.subr.bf16.mxu1 %v1456_v0  ;;  %v1210_v32 = vld [vmem:[#allocation8 + $0x8] sm:$0xff]   ;;  %v1211_v33 = vld [vmem:[#allocation8 + $0x10] sm:$0xff]   ;;  %v1212_v34 = vld [vmem:[#allocation8 + $0x18] sm:$0xff]  }
  0x89   :  { %1036 = vmatprep.subr.bf16.mxu0 %v1191_v7  ;;  %v1213_v35 = vld [vmem:[#allocation8 + $0x20] sm:$0xff]   ;;  %v1214_v36 = vld [vmem:[#allocation8 + $0x28] sm:$0xff]   ;;  %v1215_v49 = vld [vmem:[#allocation8 + $0x30] sm:$0xff]  }
  0x8a   :  { %v961_v38 = vld [vmem:[%s1714_s2] ss:$0 sm:$0xff]  ;;  %v1216_v50 = vld [vmem:[#allocation8 + $0x38] sm:$0xff]   ;;  %v1218_v52 = vld [vmem:[#allocation10 + $0x8] sm:$0xff]  }
  0x8b   :  { %1093 = vmatpush3.bf16.msra.mxu1 %v1203_v21  ;;  %v1217_v51 = vld [vmem:[#allocation10] sm:$0xff]   ;;  %v1219_v53 = vld [vmem:[#allocation10 + $0x10] sm:$0xff]   ;;  %v1220_v54 = vld [vmem:[#allocation10 + $0x18] sm:$0xff]  }
  0x8c   :  { %1037 = vmatpush3.bf16.msra.mxu0 %v1192_v8  ;;  %1094 = vmatprep.subr.bf16.mxu1 %v1456_v0  ;;  %v1221_v55 = vld [vmem:[#allocation10 + $0x20] sm:$0xff]   ;;  %v1222_v56 = vld [vmem:[#allocation10 + $0x28] sm:$0xff]   ;;  %v1223_v4 = vld [vmem:[#allocation10 + $0x30] sm:$0xff]  }
  0x8d   :  { %1038 = vmatprep.subr.bf16.mxu0 %v1193_v9  ;;  %v978_v57 = vld [vmem:[%s1716_s4] ss:$0 sm:$0xff]  ;;  %v1224_v5 = vld [vmem:[#allocation10 + $0x38] sm:$0xff]   ;;  %v1226_v7 = vld [vmem:[#allocation11 + $0x8] sm:$0xff]  }
  0x8e   :  { %v1225_v6 = vld [vmem:[#allocation11] sm:$0xff]   ;;  %v1227_v8 = vld [vmem:[#allocation11 + $0x10] sm:$0xff]   ;;  %v1228_v9 = vld [vmem:[#allocation11 + $0x18] sm:$0xff]  }
  0x8f   :  { %1095 = vmatpush3.bf16.msra.mxu1 %v1204_v25  ;;  %v987_v12 = vld [vmem:[%s1718_s6] ss:$0 sm:$0xff]  ;;  %v1232_v23 = vld [vmem:[#allocation11 + $0x38] sm:$0xff]   ;;  %v1235_v25 = vld [vmem:[#allocation13 + $0x4] ss:$8 sps:$4 sm:$0xff]  }
  0x90   :  { %1039 = vmatpush3.bf16.msra.mxu0 %v1194_v10  ;;  %1096 = vmatprep.subr.bf16.mxu1 %v1456_v0  ;;  %v1229_v10 = vld [vmem:[#allocation11 + $0x20] sm:$0xff]  }
  0x91   :  { %1040 = vmatprep.subr.bf16.mxu0 %v1195_v11  ;;  %v1230_v11 = vld [vmem:[#allocation11 + $0x28] sm:$0xff]  }
  0x92   :  { %v1233_v24 = vld [vmem:[#allocation13] ss:$8 sps:$4 sm:$0xff]  }
  0x93   :  { %1097 = vmatpush3.bf16.msra.mxu1 %v1205_v27  ;;  %v1236_v27 = vld [vmem:[#allocation13 + $0x10] ss:$8 sps:$4 sm:$0xff]  }
  0x94   :  { %1041 = vmatpush3.bf16.msra.mxu0 %v1196_v14  ;;  %1098 = vmatprep.subr.bf16.mxu1 %v1456_v0 }
  0x95   :  { %1042 = vmatprep.subr.bf16.mxu0 %v1197_v17 }
  0x97   :  { %1099 = vmatpush3.bf16.msra.mxu1 %v1206_v28  ;;  %v1241_v28 = vld [vmem:[#allocation13 + $0x24] ss:$8 sps:$4 sm:$0xff]  }
  0x98   :  { %1043 = vmatpush3.bf16.msra.mxu0 %v1198_v19  ;;  %1100 = vmatprep.subr.bf16.mxu1 %v1456_v0 }
  0x99   :  { %1044 = vmatprep.subr.bf16.mxu0 %v1199_v20 }
  0x9b   :  { %1101 = vmatpush3.bf16.msra.mxu1 %v1207_v29  ;;  %v1239_v29 = vld [vmem:[#allocation13 + $0x20] ss:$8 sps:$4 sm:$0xff]  }
  0x9c   :  { %1045 = vmatpush3.bf16.msra.mxu0 %v1200_v22  ;;  %1102 = vmatprep.subr.bf16.mxu1 %v1456_v0  ;;  %v1231_v22 = vld [vmem:[#allocation11 + $0x30] sm:$0xff]  }
  0x9d   :  { %1108 = vmatprep.subr.bf16.mxu0 %v1456_v0 }
  0x9f   :  { %315 = vmatmul.mubr.bf16.vlgmr.msra.gmra.mrb[0].mxu0 %v145_v26  ;;  %1103 = vmatpush3.bf16.msra.mxu1 %v1208_v30  ;;  %v1238_v26 = vld [vmem:[#allocation13 + $0x14] ss:$8 sps:$4 sm:$0xff]  }
  0xa0   :  { %1124 = vmatprep.mubr.msk.bf16.mxu0 %vm1457_vm0, %v1456_v0  ;;  %1128 = vmatprep.subr.bf16.mxu1 %v1456_v0  ;;  %v1244_v30 = vld [vmem:[#allocation13 + $0x34] ss:$8 sps:$4 sm:$0xff]  }
  0xa1   :  { %1109 = vmatpush3.bf16.msra.mxu0 %v1209_v31  ;;  %v1242_v31 = vld [vmem:[#allocation13 + $0x30] ss:$8 sps:$4 sm:$0xff]  }
  0xa2   :  { %1110 = vmatprep.subr.bf16.mxu0 %v1456_v0 }
  0xa5   :  { %1111 = vmatpush3.bf16.msra.mxu0 %v1210_v32  ;;  %v1247_v32 = vld [vmem:[#allocation13 + $0x44] ss:$8 sps:$4 sm:$0xff]  }
  0xa6   :  { %1112 = vmatprep.subr.bf16.mxu0 %v1456_v0 }
  0xa9   :  { %1113 = vmatpush3.bf16.msra.mxu0 %v1211_v33  ;;  %v1250_v33 = vld [vmem:[#allocation13 + $0x54] ss:$8 sps:$4 sm:$0xff]  }
  0xaa   :  { %1114 = vmatprep.subr.bf16.mxu0 %v1456_v0 }
  0xad   :  { %1115 = vmatpush3.bf16.msra.mxu0 %v1212_v34  ;;  %v1248_v34 = vld [vmem:[#allocation13 + $0x50] ss:$8 sps:$4 sm:$0xff]  }
  0xae   :  { %1116 = vmatprep.subr.bf16.mxu0 %v1456_v0 }
  0xb1   :  { %1117 = vmatpush3.bf16.msra.mxu0 %v1213_v35  ;;  %v996_v35 = vld [vmem:[%s1720_s8] ss:$0 sm:$0xff] }
  0xb2   :  { %1118 = vmatprep.subr.bf16.mxu0 %v1456_v0 }
  0xb5   :  { %1119 = vmatpush3.bf16.msra.mxu0 %v1214_v36 }
  0xb6   :  { %1120 = vmatprep.subr.bf16.mxu0 %v1456_v0 }
  0xb9   :  { %1121 = vmatpush3.bf16.msra.mxu0 %v1215_v49  ;;  %v1458_v49 = vmov 0  }
  0xba   :  { %1122 = vmatprep.subr.bf16.mxu0 %v1456_v0 }
  0xbd   :  { %1123 = vmatpush3.bf16.msra.mxu0 %v1216_v50  ;;  %v1005_v50 = vld [vmem:[%s1722_s10] ss:$0 sm:$0xff]  ;;  %s1459_s10 = smov [#allocation14]  }
  0xbe   :  { %1148 = vmatprep.subr.bf16.mxu0 %v1456_v0  ;;  %s946_s26 = sshll.u32 %s1459_s10, 4  ;;  %s947_s26 = int_to_ptr.vmem [resolvable:$true] %s946_s26 }
  0xbf   :  { %s1411_s17 = scalar_lea.vmem %s947_s26, 512  ;;  %p1416_p1 = scmp.lt.s32.totalorder %s947_s26, %s947_s26 }
  0xc0   :  { %p1412_p0 = scmp.ne.s32.totalorder %s947_s26, %s1411_s17  ;;  %p1417_p2 = scmp.lt.s32.totalorder %s1411_s17, %s1411_s17 }
  0xc2   :  { %p1418_p3 = por %p1417_p2, %p1416_p1 }
  0xc4   :  { %p1419_p4 = pnand %p1418_p3, %p1412_p0 }
 0x172   :  { %v1046_v37 = vpop.f32.mrb[0].mxu0 }
 0x173   :  { %v1047_v39 = vpop.f32.mrb[1].mxu0 }
 0x174   :  { %v1048_v40 = vadd.f32 %v1047_v39, %v1046_v37  ;;  %v1049_v41 = vpop.f32.mrb[2].mxu0 }
 0x175   :  { %v1050_v42 = vpop.f32.mrb[3].mxu0 }
 0x176   :  { %v317_v43 = vadd.f32 %v1048_v40, %v961_v38  ;;  %v1051_v44 = vadd.f32 %v1050_v42, %v1049_v41 }
 0x178   :  { %v320_v45 = vadd.f32 %v1051_v44, %v961_v38  ;;  %v323_v46 = vmax.f32 %v317_v43, 0.0 }
 0x17a   :  { %v324_v47 = vmax.f32 %v320_v45, 0.0  ;;  %v1253_v45 = vld [vmem:[#allocation13 + $0x64] ss:$8 sps:$4 sm:$0xff]  }
 0x17c   :  { %v325_v48 = vpack.c.bf16 %v324_v47, %v323_v46  ;;  %v1251_v46 = vld [vmem:[#allocation13 + $0x60] ss:$8 sps:$4 sm:$0xff]   ;;  %v1256_v47 = vld [vmem:[#allocation13 + $0x74] ss:$8 sps:$4 sm:$0xff]  }
 0x17e   :  { %1105 = vmatmul.mubr.bf16.vlgmr.msra.gmra.mrb[0].mxu1 %v325_v48  ;;  %v1254_v48 = vld [vmem:[#allocation13 + $0x70] ss:$8 sps:$4 sm:$0xff]  }
 0x17f   :  { %1144 = vmatprep.mubr.msk.bf16.mxu1 %vm1457_vm0, %v1456_v0  ;;  %1129 = vmatpush3.bf16.msra.mxu1 %v1217_v51 }
 0x180   :  { %1130 = vmatprep.subr.bf16.mxu1 %v1456_v0 }
 0x183   :  { %1131 = vmatpush3.bf16.msra.mxu1 %v1218_v52 }
 0x184   :  { %1132 = vmatprep.subr.bf16.mxu1 %v1456_v0 }
 0x187   :  { %1133 = vmatpush3.bf16.msra.mxu1 %v1219_v53 }
 0x188   :  { %1134 = vmatprep.subr.bf16.mxu1 %v1456_v0 }
 0x18b   :  { %1135 = vmatpush3.bf16.msra.mxu1 %v1220_v54 }
 0x18c   :  { %1136 = vmatprep.subr.bf16.mxu1 %v1456_v0 }
 0x18f   :  { %1137 = vmatpush3.bf16.msra.mxu1 %v1221_v55 }
 0x190   :  { %1138 = vmatprep.subr.bf16.mxu1 %v1456_v0 }
 0x193   :  { %1139 = vmatpush3.bf16.msra.mxu1 %v1222_v56 }
 0x194   :  { %1140 = vmatprep.subr.bf16.mxu1 %v1456_v0 }
 0x197   :  { %1141 = vmatpush3.bf16.msra.mxu1 %v1223_v4 }
 0x198   :  { %1142 = vmatprep.subr.bf16.mxu1 %v1456_v0 }
 0x19b   :  { %1143 = vmatpush3.bf16.msra.mxu1 %v1224_v5 }
 0x19c   :  { %894 = vmatprep.subr.bf16.mxu1 %v1235_v25 }
 0x251   :  { %v431_v58 = vpop.f32.mrb[0].mxu1 }
 0x252   :  { %v432_v59 = vadd.f32 %v978_v57, %v431_v58  ;;  %v1106_v60 = vpop.f32.mrb[1].mxu1 }
 0x253   :  { %v434_v61 = vpop.f32.mrb[2].mxu1  ;;  %v804_v60 = vlaneseq }
 0x254   :  { %v435_v62 = vadd.f32 %v978_v57, %v434_v61  ;;  %v1107_v63 = vpop.f32.mrb[3].mxu1  ;;  %v438_v1 = vmax.f32 %v432_v59, 0.0 }
 0x255   :  { %v805_v61 = vshrl.u32 %v804_v60, 7  ;;  %v802_v63 = vld [vmem:[%s1724_s12] sm:$0x3] }
 0x256   :  { %v439_v2 = vmax.f32 %v435_v62, 0.0 }
 0x257   :  { %v806_v62 = vsub.s32 0, %v805_v61 }
 0x258   :  { %v440_v3 = vpack.c.bf16 %v439_v2, %v438_v1  ;;  %v810_v1 = vsub.s32 1, %v805_v61 }
 0x259   :  { %v807_v2 = vrot.slane %v802_v63, %v806_v62 }
 0x25a   :  { %1125 = vmatmul.mubr.bf16.vlgmr.msra.gmra.mrb[4].mxu0 %v440_v3  ;;  %v811_v3 = vrot.slane %v802_v63, %v810_v1 }
 0x25b   :  { %1164 = vmatprep.mubr.msk.bf16.mxu0 %vm1457_vm0, %v1456_v0  ;;  %1149 = vmatpush3.bf16.msra.mxu0 %v1225_v6 }
 0x25c   :  { %1150 = vmatprep.subr.bf16.mxu0 %v1456_v0 }
 0x25f   :  { %1151 = vmatpush3.bf16.msra.mxu0 %v1226_v7 }
 0x260   :  { %1152 = vmatprep.subr.bf16.mxu0 %v1456_v0 }
 0x263   :  { %1153 = vmatpush3.bf16.msra.mxu0 %v1227_v8 }
 0x264   :  { %1154 = vmatprep.subr.bf16.mxu0 %v1456_v0 }
 0x267   :  { %1155 = vmatpush3.bf16.msra.mxu0 %v1228_v9 }
 0x268   :  { %1156 = vmatprep.subr.bf16.mxu0 %v1456_v0 }
 0x26b   :  { %1157 = vmatpush3.bf16.msra.mxu0 %v1229_v10 }
 0x26c   :  { %1158 = vmatprep.subr.bf16.mxu0 %v1456_v0 }
 0x26f   :  { %1159 = vmatpush3.bf16.msra.mxu0 %v1230_v11 }
 0x270   :  { %1160 = vmatprep.subr.bf16.mxu0 %v1456_v0 }
 0x273   :  { %1161 = vmatpush3.bf16.msra.mxu0 %v1231_v22 }
 0x274   :  { %1162 = vmatprep.subr.bf16.mxu0 %v1456_v0  ;;  %v1245_v0 = vld [vmem:[#allocation13 + $0x40] ss:$8 sps:$4 sm:$0xff]  }
 0x277   :  { %1163 = vmatpush3.bf16.msra.mxu0 %v1232_v23 }
 0x32d   :  { %v546_v13 = vpop.f32.mrb[4].mxu0 }
 0x32e   :  { %v547_v14 = vadd.f32 %v987_v12, %v546_v13  ;;  %v1126_v15 = vpop.f32.mrb[5].mxu0 }
 0x32f   :  { %v549_v16 = vpop.f32.mrb[6].mxu0 }
 0x330   :  { %v550_v17 = vadd.f32 %v987_v12, %v549_v16  ;;  %v1127_v18 = vpop.f32.mrb[7].mxu0  ;;  %v553_v19 = vmax.f32 %v547_v14, 0.0 }
 0x332   :  { %v554_v20 = vmax.f32 %v550_v17, 0.0 }
 0x334   :  { %v555_v21 = vpack.c.bf16 %v554_v20, %v553_v19 }
 0x336   :  { %1145 = vmatmul.mubr.bf16.vlgmr.msra.gmra.mrb[4].mxu1 %v555_v21 }
 0x337   :  { %895 = vmatpush1.bf16.msra.mxu1 %v1233_v24  ;;  %926 = vmatprep.mubr.bf16.mxu1 %v1458_v49 }
 0x338   :  { %896 = vmatprep.subr.bf16.mxu1 %v1238_v26 }
 0x33b   :  { %897 = vmatpush1.bf16.msra.mxu1 %v1236_v27 }
 0x33c   :  { %898 = vmatprep.subr.bf16.mxu1 %v1241_v28 }
 0x33f   :  { %899 = vmatpush1.bf16.msra.mxu1 %v1239_v29 }
 0x340   :  { %900 = vmatprep.subr.bf16.mxu1 %v1244_v30 }
 0x343   :  { %901 = vmatpush1.bf16.msra.mxu1 %v1242_v31 }
 0x344   :  { %902 = vmatprep.subr.bf16.mxu1 %v1247_v32 }
 0x347   :  { %903 = vmatpush1.bf16.msra.mxu1 %v1245_v0 }
 0x348   :  { %904 = vmatprep.subr.bf16.mxu1 %v1250_v33 }
 0x34b   :  { %905 = vmatpush1.bf16.msra.mxu1 %v1248_v34 }
 0x34c   :  { %906 = vmatprep.subr.bf16.mxu1 %v1253_v45 }
 0x34f   :  { %907 = vmatpush1.bf16.msra.mxu1 %v1251_v46 }
 0x350   :  { %908 = vmatprep.subr.bf16.mxu1 %v1256_v47 }
 0x353   :  { %909 = vmatpush1.bf16.msra.mxu1 %v1254_v48 }
 0x409   :  { %v661_v36 = vpop.f32.mrb[4].mxu1 }
 0x40a   :  { %v662_v37 = vadd.f32 %v996_v35, %v661_v36  ;;  %v1146_v38 = vpop.f32.mrb[5].mxu1 }
 0x40b   :  { %v664_v39 = vpop.f32.mrb[6].mxu1 }
 0x40c   :  { %v665_v40 = vadd.f32 %v996_v35, %v664_v39  ;;  %v1147_v41 = vpop.f32.mrb[7].mxu1  ;;  %v668_v42 = vmax.f32 %v662_v37, 0.0 }
 0x40e   :  { %v669_v43 = vmax.f32 %v665_v40, 0.0 }
 0x410   :  { %v670_v44 = vpack.c.bf16 %v669_v43, %v668_v42 }
 0x412   :  { %1165 = vmatmul.mubr.bf16.vlgmr.msra.gmra.mrb[8].mxu0 %v670_v44 }
 0x4e5   :  { %v776_v51 = vpop.f32.mrb[8].mxu0 }
 0x4e6   :  { %v777_v52 = vadd.f32 %v1005_v50, %v776_v51  ;;  %v1166_v53 = vpop.f32.mrb[9].mxu0 }
 0x4e7   :  { %v779_v54 = vpop.f32.mrb[10].mxu0 }
 0x4e8   :  { %v780_v55 = vadd.f32 %v1005_v50, %v779_v54  ;;  %v1167_v56 = vpop.f32.mrb[11].mxu0  ;;  %v783_v57 = vmax.f32 %v777_v52, 0.0 }
 0x4ea   :  { %v784_v58 = vmax.f32 %v780_v55, 0.0 }
 0x4ec   :  { %v785_v59 = vpack.c.bf16 %v784_v58, %v783_v57 }
 0x4ee   :  { %927 = vmatmul.mubr.bf16.vlgmr.msra.gmra.mrb[8].mxu1 %v785_v59 }
 0x5c1   :  { %v928_v4 = vpop.f32.mrb[8].mxu1 }
 0x5c2   :  { %v929_v5 = vadd.f32 %v928_v4, %v807_v2  ;;  %v930_v6 = vpop.f32.mrb[9].mxu1 }
 0x5c3   :  { %v931_v7 = vadd.f32 %v930_v6, %v811_v3  ;;  %v932_v8 = vpop.f32.mrb[10].mxu1 }
 0x5c4   :  { %937 = vst [vmem:[#allocation14] sm:$0xff] %v929_v5  ;;  %v933_v9 = vadd.f32 %v932_v8, %v807_v2  ;;  %v934_v10 = vpop.f32.mrb[11].mxu1 }
 0x5c5   :  { %938 = vst [vmem:[#allocation14 + $0x8] sm:$0xff] %v931_v7  ;;  %v935_v11 = vadd.f32 %v934_v10, %v811_v3 }
 0x5c6   :  { %939 = vst [vmem:[#allocation14 + $0x10] sm:$0xff] %v933_v9 }
 0x5c7   :  { %940 = vst [vmem:[#allocation14 + $0x18] sm:$0xff] %v935_v11 }
 0x5c8   :  { %1422 = shalt.err (!%p1419_p4)
}
 0x5c9   :  { %s1423_s21 = scalar_lea.hbm %s1725_s13, 512 }
 0x5ca   :  { %p1424_p5 = scmp.ne.s32.totalorder %s1725_s13, %s1423_s21  ;;  %p1427_p6 = scmp.lt.u32.totalorder %s1423_s21, %s1725_s13 }
 0x5cc   :  { %p1429_p7 = pnand %p1427_p6, %p1424_p5 }
 0x5ce   :  { %1432 = shalt.err (!%p1429_p7)
}
 0x5cf   :  { %952 = dma.vmem_to_hbm [thread:$0]  %s947_s26, 512, %s1725_s13, [#allocation4], %s1449_s9, %s1449_s9, %s1450_s25  }
 0x5d0   :  { %1441 = dma.done.wait [#allocation4], 512  }
 0x5d1   :  { %1442 = vsyncadd [#allocation4], 4294966784 }
 0x5d2   :  { %956 = vsyncpa [#allocation3], 1 }
 0x5d3   :  { %957 = vsyncpa [#allocation6], 1 }
 0x5d4   :  { %958 = vsyncpa [#allocation9], 1 }
 0x5d5   :  { %959 = vsyncpa [#allocation12], 1 }
 0x5d6   :  { %960 = vsyncpa [#allocation4], 1 }

// kernel: tpu_custom_call.1
= control target key start
LH: loop header
LB: loop body
LE: loop exit
PB: predicated region body
PF: predicated region fallthrough
CT: control target
= control target key end

     0   :  { %18 = vsyncpa [#allocation3], 0  ;;  %s1712_s0 = inlined_call_operand.hbm [shape: f32[16,256], index: 0, kind: input, shape index: {}]   ;;  %s1713_s1 = inlined_call_operand.hbm [shape: bf16[256,128], index: 1, kind: input, shape index: {}]   ;;  %s1714_s2 = inlined_call_operand.vmem [shape: f32[1,128], index: 2, kind: input, shape index: {}]   ;;  %s1715_s3 = inlined_call_operand.hbm [shape: bf16[128,128], index: 3, kind: input, shape index: {}]   ;;  %s1716_s4 = inlined_call_operand.vmem [shape: f32[1,128], index: 4, kind: input, shape index: {}]   ;;  %s1717_s5 = inlined_call_operand.hbm [shape: bf16[128,128], index: 5, kind: input, shape index: {}]   ;;  %s1718_s6 = inlined_call_operand.vmem [shape: f32[1,128], index: 6, kind: input, shape index: {}]   ;;  %s1719_s7 = inlined_call_operand.hbm [shape: bf16[128,128], index: 7, kind: input, shape index: {}]   ;;  %s1720_s8 = inlined_call_operand.vmem [shape: f32[1,128], index: 8, kind: input, shape index: {}]   ;;  %s1721_s9 = inlined_call_operand.hbm [shape: bf16[128,128], index: 9, kind: input, shape index: {}]   ;;  %s1722_s10 = inlined_call_operand.vmem [shape: f32[1,128], index: 10, kind: input, shape index: {}]   ;;  %s1723_s11 = inlined_call_operand.hbm [shape: bf16[128,256], index: 11, kind: input, shape index: {}]   ;;  %s1724_s12 = inlined_call_operand.vmem [shape: f32[1,256], index: 12, kind: input, shape index: {}]   ;;  %s1725_s13 = inlined_call_operand.hbm [shape: f32[16,256], index: 13, kind: output, shape index: {}]  }
   0x1   :  { %19 = vsyncpa [#allocation6], 0 }
   0x2   :  { %20 = vsyncpa [#allocation9], 0 }
   0x3   :  { %21 = vsyncpa [#allocation12], 0 }
   0x4   :  { %22 = vsyncpa [#allocation4], 0  ;;  %s1443_s25 = smov [#allocation5]   ;;  %s1257_s29 = scalar_lea.hbm %s1713_s1, 2048 }
   0x5   :  { %s40_s26 = sshll.u32 %s1443_s25, 4  ;;  %p1258_p0 = scmp.ne.s32.totalorder %s1713_s1, %s1257_s29  ;;  %s41_s26 = int_to_ptr.vmem [resolvable:$true] %s40_s26 }
   0x6   :  { %p1261_p1 = scmp.lt.u32.totalorder %s1257_s29, %s1713_s1 }
   0x8   :  { %p1263_p2 = pnand %p1261_p1, %p1258_p0 }
   0xa   :  { %1266 = shalt.err (!%p1263_p2)
}
   0xb   :  { %s1267_s17 = scalar_lea.vmem %s41_s26, 2048  ;;  %p1272_p4 = scmp.lt.s32.totalorder %s41_s26, %s41_s26 }
   0xc   :  { %p1268_p3 = scmp.ne.s32.totalorder %s41_s26, %s1267_s17  ;;  %p1273_p5 = scmp.lt.s32.totalorder %s1267_s17, %s1267_s17 }
   0xe   :  { %p1274_p6 = por %p1273_p5, %p1272_p4 }
  0x10   :  { %p1275_p7 = pnand %p1274_p6, %p1268_p3 }
  0x12   :  { %1278 = shalt.err (!%p1275_p7)
}
  0x13   :  { %s1444_s18 = smov 64   ;;  %s1445_s19 = smov 4  }
  0x14   :  { %46 = dma.hbm_to_vmem [thread:$0]  %s1713_s1, 2048, %s41_s26, [#allocation6], %s1444_s18, %s1444_s18, %s1445_s19  }
  0x15   :  { %s1446_s22 = smov [#allocation8]   ;;  %s1447_s24 = smov [#allocation11]  }
  0x16   :  { %s68_s23 = sshll.u32 %s1446_s22, 4  ;;  %s96_s25 = sshll.u32 %s1447_s24, 4  ;;  %s69_s23 = int_to_ptr.vmem [resolvable:$true] %s68_s23  ;;  %s97_s25 = int_to_ptr.vmem [resolvable:$true] %s96_s25 }
  0x17   :  { %s1279_s29 = scalar_lea.hbm %s1717_s5, 1024 }
  0x18   :  { %p1280_p8 = scmp.ne.s32.totalorder %s1717_s5, %s1279_s29  ;;  %p1283_p9 = scmp.lt.u32.totalorder %s1279_s29, %s1717_s5 }
  0x1a   :  { %p1285_p10 = pnand %p1283_p9, %p1280_p8 }
  0x1c   :  { %1288 = shalt.err (!%p1285_p10)
}
  0x1d   :  { %s1289_s1 = scalar_lea.vmem %s69_s23, 1024  ;;  %p1294_p12 = scmp.lt.s32.totalorder %s69_s23, %s69_s23 }
  0x1e   :  { %p1290_p11 = scmp.ne.s32.totalorder %s69_s23, %s1289_s1  ;;  %p1295_p13 = scmp.lt.s32.totalorder %s1289_s1, %s1289_s1 }
  0x20   :  { %p1296_p0 = por %p1295_p13, %p1294_p12 }
  0x22   :  { %p1297_p1 = pnand %p1296_p0, %p1290_p11 }
  0x24   :  { %1300 = shalt.err (!%p1297_p1)
}
  0x25   :  { %74 = dma.hbm_to_vmem [thread:$0]  %s1717_s5, 1024, %s69_s23, [#allocation9], %s1444_s18, %s1444_s18, %s1445_s19  }
  0x26   :  { %s1301_s22 = scalar_lea.hbm %s1721_s9, 1024 }
  0x27   :  { %p1302_p2 = scmp.ne.s32.totalorder %s1721_s9, %s1301_s22  ;;  %p1305_p3 = scmp.lt.u32.totalorder %s1301_s22, %s1721_s9 }
  0x29   :  { %p1307_p4 = pnand %p1305_p3, %p1302_p2 }
  0x2b   :  { %1310 = shalt.err (!%p1307_p4)
}
  0x2c   :  { %s1311_s30 = scalar_lea.vmem %s97_s25, 1024  ;;  %p1316_p6 = scmp.lt.s32.totalorder %s97_s25, %s97_s25 }
  0x2d   :  { %p1312_p5 = scmp.ne.s32.totalorder %s97_s25, %s1311_s30  ;;  %p1317_p7 = scmp.lt.s32.totalorder %s1311_s30, %s1311_s30 }
  0x2f   :  { %p1318_p8 = por %p1317_p7, %p1316_p6 }
  0x31   :  { %p1319_p9 = pnand %p1318_p8, %p1312_p5 }
  0x33   :  { %1322 = shalt.err (!%p1319_p9)
}
  0x34   :  { %102 = dma.hbm_to_vmem [thread:$0]  %s1721_s9, 1024, %s97_s25, [#allocation12], %s1444_s18, %s1444_s18, %s1445_s19  }
  0x35   :  { %s1448_s14 = smov [#allocation2]   ;;  %s1323_s26 = scalar_lea.hbm %s1712_s0, 512 }
  0x36   :  { %s28_s15 = sshll.u32 %s1448_s14, 4  ;;  %p1324_p10 = scmp.ne.s32.totalorder %s1712_s0, %s1323_s26  ;;  %s29_s15 = int_to_ptr.vmem [resolvable:$true] %s28_s15 }
  0x37   :  { %p1327_p11 = scmp.lt.u32.totalorder %s1323_s26, %s1712_s0 }
  0x39   :  { %p1329_p12 = pnand %p1327_p11, %p1324_p10 }
  0x3b   :  { %1332 = shalt.err (!%p1329_p12)
}
  0x3c   :  { %s1333_s24 = scalar_lea.vmem %s29_s15, 512  ;;  %p1338_p0 = scmp.lt.s32.totalorder %s29_s15, %s29_s15 }
  0x3d   :  { %p1334_p13 = scmp.ne.s32.totalorder %s29_s15, %s1333_s24  ;;  %p1339_p1 = scmp.lt.s32.totalorder %s1333_s24, %s1333_s24 }
  0x3f   :  { %p1340_p2 = por %p1339_p1, %p1338_p0 }
  0x41   :  { %p1341_p3 = pnand %p1340_p2, %p1334_p13 }
  0x43   :  { %1344 = shalt.err (!%p1341_p3)
}
  0x44   :  { %s1449_s9 = smov 256   ;;  %s1450_s25 = smov 16  }
  0x45   :  { %34 = dma.hbm_to_vmem [thread:$0]  %s1712_s0, 512, %s29_s15, [#allocation3], %s1449_s9, %s1449_s9, %s1450_s25  }
  0x46   :  { %s1451_s29 = smov [#allocation7]   ;;  %s1452_s5 = smov [#allocation10]  }
  0x47   :  { %s54_s30 = sshll.u32 %s1451_s29, 4  ;;  %s82_s23 = sshll.u32 %s1452_s5, 4  ;;  %s55_s30 = int_to_ptr.vmem [resolvable:$true] %s54_s30  ;;  %s1590_s23 = int_to_ptr.vmem [resolvable:$true] %s82_s23 }
  0x48   :  { %s1345_s1 = scalar_lea.hbm %s1715_s3, 1024 }
  0x49   :  { %p1346_p4 = scmp.ne.s32.totalorder %s1715_s3, %s1345_s1  ;;  %p1349_p5 = scmp.lt.u32.totalorder %s1345_s1, %s1715_s3 }
  0x4b   :  { %p1351_p6 = pnand %p1349_p5, %p1346_p4 }
  0x4d   :  { %1354 = shalt.err (!%p1351_p6)
}
  0x4e   :  { %s1355_s0 = scalar_lea.vmem %s55_s30, 1024  ;;  %p1360_p8 = scmp.lt.s32.totalorder %s55_s30, %s55_s30 }
  0x4f   :  { %p1356_p7 = scmp.ne.s32.totalorder %s55_s30, %s1355_s0  ;;  %p1361_p9 = scmp.lt.s32.totalorder %s1355_s0, %s1355_s0 }
  0x51   :  { %p1362_p10 = por %p1361_p9, %p1360_p8 }
  0x53   :  { %p1363_p11 = pnand %p1362_p10, %p1356_p7 }
  0x55   :  { %1366 = shalt.err (!%p1363_p11)
}
  0x56   :  { %60 = dma.hbm_to_vmem [thread:$0]  %s1715_s3, 1024, %s55_s30, [#allocation6], %s1444_s18, %s1444_s18, %s1445_s19  }
  0x57   :  { %s1367_s28 = scalar_lea.hbm %s1719_s7, 1024 }
  0x58   :  { %p1368_p12 = scmp.ne.s32.totalorder %s1719_s7, %s1367_s28  ;;  %p1371_p13 = scmp.lt.u32.totalorder %s1367_s28, %s1719_s7 }
  0x5a   :  { %p1373_p0 = pnand %p1371_p13, %p1368_p12 }
  0x5c   :  { %1376 = shalt.err (!%p1373_p0)
}
  0x5d   :  { %s1377_s1 = scalar_lea.vmem %s1590_s23, 1024  ;;  %p1382_p2 = scmp.lt.s32.totalorder %s1590_s23, %s1590_s23 }
  0x5e   :  { %p1378_p1 = scmp.ne.s32.totalorder %s1590_s23, %s1377_s1  ;;  %p1383_p3 = scmp.lt.s32.totalorder %s1377_s1, %s1377_s1 }
  0x60   :  { %p1384_p4 = por %p1383_p3, %p1382_p2 }
  0x62   :  { %p1385_p5 = pnand %p1384_p4, %p1378_p1 }
  0x64   :  { %1388 = shalt.err (!%p1385_p5)
}
  0x65   :  { %88 = dma.hbm_to_vmem [thread:$0]  %s1719_s7, 1024, %s1590_s23, [#allocation9], %s1444_s18, %s1444_s18, %s1445_s19  }
  0x66   :  { %s1453_s26 = smov [#allocation13]   ;;  %s1389_s0 = scalar_lea.hbm %s1723_s11, 2048 }
  0x67   :  { %s110_s17 = sshll.u32 %s1453_s26, 4  ;;  %p1390_p6 = scmp.ne.s32.totalorder %s1723_s11, %s1389_s0  ;;  %s111_s17 = int_to_ptr.vmem [resolvable:$true] %s110_s17 }
  0x68   :  { %p1393_p7 = scmp.lt.u32.totalorder %s1389_s0, %s1723_s11 }
  0x6a   :  { %p1395_p8 = pnand %p1393_p7, %p1390_p6 }
  0x6c   :  { %1398 = shalt.err (!%p1395_p8)
}
  0x6d   :  { %s1399_s28 = scalar_lea.vmem %s111_s17, 2048  ;;  %p1404_p10 = scmp.lt.s32.totalorder %s111_s17, %s111_s17 }
  0x6e   :  { %p1400_p9 = scmp.ne.s32.totalorder %s111_s17, %s1399_s28  ;;  %p1405_p11 = scmp.lt.s32.totalorder %s1399_s28, %s1399_s28 }
  0x70   :  { %p1406_p12 = por %p1405_p11, %p1404_p10 }
  0x72   :  { %p1407_p13 = pnand %p1406_p12, %p1400_p9 }
  0x74   :  { %1410 = shalt.err (!%p1407_p13)
}
  0x75   :  { %s1454_s7 = smov 128   ;;  %s1455_s18 = smov 8  }
  0x76   :  { %116 = dma.hbm_to_vmem [thread:$0]  %s1723_s11, 2048, %s111_s17, [#allocation12], %s1454_s7, %s1454_s7, %s1455_s18  }
  0x77   :  { %1433 = dma.done.wait [#allocation3], 512  }
  0x78   :  { %1434 = vsyncadd [#allocation3], 4294966784 }
  0x79   :  { %1435 = dma.done.wait [#allocation6], 3072  }
  0x7a   :  { %1436 = vsyncadd [#allocation6], 4294964224 }
  0x7b   :  { %1437 = dma.done.wait [#allocation9], 2048  }
  0x7c   :  { %1438 = vsyncadd [#allocation9], 4294965248 }
  0x7d   :  { %1439 = dma.done.wait [#allocation12], 3072  }
  0x7e   :  { %1440 = vsyncadd [#allocation12], 4294964224  ;;  %v1456_v0 = vmov 0.0   ;;  %v1185_v1 = vld [vmem:[#allocation5 + $0x40] sm:$0xff]   ;;  %v1187_v3 = vld [vmem:[#allocation5 + $0x48] sm:$0xff]   ;;  %vm1457_vm0 = vmmov 0  }
  0x7f   :  { %1088 = vmatprep.subr.bf16.mxu1 %v1456_v0  ;;  %v1186_v2 = vld [vmem:[#allocation5] sm:$0xff]   ;;  %1030 = vmatprep.subr.bf16.mxu0 %v1185_v1  ;;  %v1188_v4 = vld [vmem:[#allocation5 + $0x8] sm:$0xff]   ;;  %v1189_v5 = vld [vmem:[#allocation5 + $0x50] sm:$0xff]  }
  0x80   :  { %1031 = vmatpush3.bf16.msra.mxu0 %v1186_v2  ;;  %v1190_v6 = vld [vmem:[#allocation5 + $0x10] sm:$0xff]   ;;  %v1191_v7 = vld [vmem:[#allocation5 + $0x58] sm:$0xff]   ;;  %v1193_v9 = vld [vmem:[#allocation5 + $0x60] sm:$0xff]   ;;  %1104 = vmatprep.mubr.msk.bf16.mxu1 %vm1457_vm0, %v1456_v0 }
  0x81   :  { %1032 = vmatprep.subr.bf16.mxu0 %v1187_v3  ;;  %v1192_v8 = vld [vmem:[#allocation5 + $0x18] sm:$0xff]   ;;  %v1194_v10 = vld [vmem:[#allocation5 + $0x20] sm:$0xff]   ;;  %v1195_v11 = vld [vmem:[#allocation5 + $0x68] sm:$0xff]  }
  0x82   :  { %v142_v12 = vld [vmem:[#allocation2 + $0x8] sm:$0xff]  ;;  %v144_v13 = vld [vmem:[#allocation2 + $0x18] sm:$0xff]  ;;  %v1201_v16 = vld [vmem:[#allocation7] sm:$0xff]  }
  0x83   :  { %v1196_v14 = vld [vmem:[#allocation5 + $0x28] sm:$0xff]   ;;  %v146_v15 = vpack.c.bf16 %v144_v13, %v142_v12  ;;  %v1197_v17 = vld [vmem:[#allocation5 + $0x70] sm:$0xff]   ;;  %1089 = vmatpush3.bf16.msra.mxu1 %v1201_v16  ;;  %v1199_v20 = vld [vmem:[#allocation5 + $0x78] sm:$0xff]  }
  0x84   :  { %1033 = vmatpush3.bf16.msra.mxu0 %v1188_v4  ;;  %v1202_v18 = vld [vmem:[#allocation7 + $0x8] sm:$0xff]   ;;  %v1198_v19 = vld [vmem:[#allocation5 + $0x30] sm:$0xff]   ;;  %1090 = vmatprep.subr.bf16.mxu1 %v1456_v0  ;;  %v1200_v22 = vld [vmem:[#allocation5 + $0x38] sm:$0xff]  }
  0x85   :  { %1034 = vmatprep.subr.bf16.mxu0 %v1189_v5  ;;  %314 = vmatprep.mubr.bf16.mxu0 %v146_v15  ;;  %v1203_v21 = vld [vmem:[#allocation7 + $0x10] sm:$0xff]   ;;  %v141_v23 = vld [vmem:[#allocation2] sm:$0xff]  ;;  %v1204_v25 = vld [vmem:[#allocation7 + $0x18] sm:$0xff]  }
  0x86   :  { %v143_v24 = vld [vmem:[#allocation2 + $0x10] sm:$0xff]  ;;  %v1205_v27 = vld [vmem:[#allocation7 + $0x20] sm:$0xff]   ;;  %v1206_v28 = vld [vmem:[#allocation7 + $0x28] sm:$0xff]  }
  0x87   :  { %1091 = vmatpush3.bf16.msra.mxu1 %v1202_v18  ;;  %v145_v26 = vpack.c.bf16 %v143_v24, %v141_v23  ;;  %v1207_v29 = vld [vmem:[#allocation7 + $0x30] sm:$0xff]   ;;  %v1208_v30 = vld [vmem:[#allocation7 + $0x38] sm:$0xff]   ;;  %v1209_v31 = vld [vmem:[#allocation8] sm:$0xff]  }
  0x88   :  { %1035 = vmatpush3.bf16.msra.mxu0 %v1190_v6  ;;  %1092 = vmatprep.subr.bf16.mxu1 %v1456_v0  ;;  %v1210_v32 = vld [vmem:[#allocation8 + $0x8] sm:$0xff]   ;;  %v1211_v33 = vld [vmem:[#allocation8 + $0x10] sm:$0xff]   ;;  %v1212_v34 = vld [vmem:[#allocation8 + $0x18] sm:$0xff]  }
  0x89   :  { %1036 = vmatprep.subr.bf16.mxu0 %v1191_v7  ;;  %v1213_v35 = vld [vmem:[#allocation8 + $0x20] sm:$0xff]   ;;  %v1214_v36 = vld [vmem:[#allocation8 + $0x28] sm:$0xff]   ;;  %v1215_v49 = vld [vmem:[#allocation8 + $0x30] sm:$0xff]  }
  0x8a   :  { %v961_v38 = vld [vmem:[%s1714_s2] ss:$0 sm:$0xff]  ;;  %v1216_v50 = vld [vmem:[#allocation8 + $0x38] sm:$0xff]   ;;  %v1218_v52 = vld [vmem:[#allocation10 + $0x8] sm:$0xff]  }
  0x8b   :  { %1093 = vmatpush3.bf16.msra.mxu1 %v1203_v21  ;;  %v1217_v51 = vld [vmem:[#allocation10] sm:$0xff]   ;;  %v1219_v53 = vld [vmem:[#allocation10 + $0x10] sm:$0xff]   ;;  %v1220_v54 = vld [vmem:[#allocation10 + $0x18] sm:$0xff]  }
  0x8c   :  { %1037 = vmatpush3.bf16.msra.mxu0 %v1192_v8  ;;  %1094 = vmatprep.subr.bf16.mxu1 %v1456_v0  ;;  %v1221_v55 = vld [vmem:[#allocation10 + $0x20] sm:$0xff]   ;;  %v1222_v56 = vld [vmem:[#allocation10 + $0x28] sm:$0xff]   ;;  %v1223_v4 = vld [vmem:[#allocation10 + $0x30] sm:$0xff]  }
  0x8d   :  { %1038 = vmatprep.subr.bf16.mxu0 %v1193_v9  ;;  %v978_v57 = vld [vmem:[%s1716_s4] ss:$0 sm:$0xff]  ;;  %v1224_v5 = vld [vmem:[#allocation10 + $0x38] sm:$0xff]   ;;  %v1226_v7 = vld [vmem:[#allocation11 + $0x8] sm:$0xff]  }
  0x8e   :  { %v1225_v6 = vld [vmem:[#allocation11] sm:$0xff]   ;;  %v1227_v8 = vld [vmem:[#allocation11 + $0x10] sm:$0xff]   ;;  %v1228_v9 = vld [vmem:[#allocation11 + $0x18] sm:$0xff]  }
  0x8f   :  { %1095 = vmatpush3.bf16.msra.mxu1 %v1204_v25  ;;  %v987_v12 = vld [vmem:[%s1718_s6] ss:$0 sm:$0xff]  ;;  %v1232_v23 = vld [vmem:[#allocation11 + $0x38] sm:$0xff]   ;;  %v1235_v25 = vld [vmem:[#allocation13 + $0x4] ss:$8 sps:$4 sm:$0xff]  }
  0x90   :  { %1039 = vmatpush3.bf16.msra.mxu0 %v1194_v10  ;;  %1096 = vmatprep.subr.bf16.mxu1 %v1456_v0  ;;  %v1229_v10 = vld [vmem:[#allocation11 + $0x20] sm:$0xff]  }
  0x91   :  { %1040 = vmatprep.subr.bf16.mxu0 %v1195_v11  ;;  %v1230_v11 = vld [vmem:[#allocation11 + $0x28] sm:$0xff]  }
  0x92   :  { %v1233_v24 = vld [vmem:[#allocation13] ss:$8 sps:$4 sm:$0xff]  }
  0x93   :  { %1097 = vmatpush3.bf16.msra.mxu1 %v1205_v27  ;;  %v1236_v27 = vld [vmem:[#allocation13 + $0x10] ss:$8 sps:$4 sm:$0xff]  }
  0x94   :  { %1041 = vmatpush3.bf16.msra.mxu0 %v1196_v14  ;;  %1098 = vmatprep.subr.bf16.mxu1 %v1456_v0 }
  0x95   :  { %1042 = vmatprep.subr.bf16.mxu0 %v1197_v17 }
  0x97   :  { %1099 = vmatpush3.bf16.msra.mxu1 %v1206_v28  ;;  %v1241_v28 = vld [vmem:[#allocation13 + $0x24] ss:$8 sps:$4 sm:$0xff]  }
  0x98   :  { %1043 = vmatpush3.bf16.msra.mxu0 %v1198_v19  ;;  %1100 = vmatprep.subr.bf16.mxu1 %v1456_v0 }
  0x99   :  { %1044 = vmatprep.subr.bf16.mxu0 %v1199_v20 }
  0x9b   :  { %1101 = vmatpush3.bf16.msra.mxu1 %v1207_v29  ;;  %v1239_v29 = vld [vmem:[#allocation13 + $0x20] ss:$8 sps:$4 sm:$0xff]  }
  0x9c   :  { %1045 = vmatpush3.bf16.msra.mxu0 %v1200_v22  ;;  %1102 = vmatprep.subr.bf16.mxu1 %v1456_v0  ;;  %v1231_v22 = vld [vmem:[#allocation11 + $0x30] sm:$0xff]  }
  0x9d   :  { %1108 = vmatprep.subr.bf16.mxu0 %v1456_v0 }
  0x9f   :  { %315 = vmatmul.mubr.bf16.vlgmr.msra.gmra.mrb[0].mxu0 %v145_v26  ;;  %1103 = vmatpush3.bf16.msra.mxu1 %v1208_v30  ;;  %v1238_v26 = vld [vmem:[#allocation13 + $0x14] ss:$8 sps:$4 sm:$0xff]  }
  0xa0   :  { %1124 = vmatprep.mubr.msk.bf16.mxu0 %vm1457_vm0, %v1456_v0  ;;  %1128 = vmatprep.subr.bf16.mxu1 %v1456_v0  ;;  %v1244_v30 = vld [vmem:[#allocation13 + $0x34] ss:$8 sps:$4 sm:$0xff]  }
  0xa1   :  { %1109 = vmatpush3.bf16.msra.mxu0 %v1209_v31  ;;  %v1242_v31 = vld [vmem:[#allocation13 + $0x30] ss:$8 sps:$4 sm:$0xff]  }
  0xa2   :  { %1110 = vmatprep.subr.bf16.mxu0 %v1456_v0 }
  0xa5   :  { %1111 = vmatpush3.bf16.msra.mxu0 %v1210_v32  ;;  %v1247_v32 = vld [vmem:[#allocation13 + $0x44] ss:$8 sps:$4 sm:$0xff]  }
  0xa6   :  { %1112 = vmatprep.subr.bf16.mxu0 %v1456_v0 }
  0xa9   :  { %1113 = vmatpush3.bf16.msra.mxu0 %v1211_v33  ;;  %v1250_v33 = vld [vmem:[#allocation13 + $0x54] ss:$8 sps:$4 sm:$0xff]  }
  0xaa   :  { %1114 = vmatprep.subr.bf16.mxu0 %v1456_v0 }
  0xad   :  { %1115 = vmatpush3.bf16.msra.mxu0 %v1212_v34  ;;  %v1248_v34 = vld [vmem:[#allocation13 + $0x50] ss:$8 sps:$4 sm:$0xff]  }
  0xae   :  { %1116 = vmatprep.subr.bf16.mxu0 %v1456_v0 }
  0xb1   :  { %1117 = vmatpush3.bf16.msra.mxu0 %v1213_v35  ;;  %v996_v35 = vld [vmem:[%s1720_s8] ss:$0 sm:$0xff] }
  0xb2   :  { %1118 = vmatprep.subr.bf16.mxu0 %v1456_v0 }
  0xb5   :  { %1119 = vmatpush3.bf16.msra.mxu0 %v1214_v36 }
  0xb6   :  { %1120 = vmatprep.subr.bf16.mxu0 %v1456_v0 }
  0xb9   :  { %1121 = vmatpush3.bf16.msra.mxu0 %v1215_v49  ;;  %v1458_v49 = vmov 0  }
  0xba   :  { %1122 = vmatprep.subr.bf16.mxu0 %v1456_v0 }
  0xbd   :  { %1123 = vmatpush3.bf16.msra.mxu0 %v1216_v50  ;;  %v1005_v50 = vld [vmem:[%s1722_s10] ss:$0 sm:$0xff]  ;;  %s1459_s10 = smov [#allocation14]  }
  0xbe   :  { %1148 = vmatprep.subr.bf16.mxu0 %v1456_v0  ;;  %s946_s26 = sshll.u32 %s1459_s10, 4  ;;  %s947_s26 = int_to_ptr.vmem [resolvable:$true] %s946_s26 }
  0xbf   :  { %s1411_s17 = scalar_lea.vmem %s947_s26, 512  ;;  %p1416_p1 = scmp.lt.s32.totalorder %s947_s26, %s947_s26 }
  0xc0   :  { %p1412_p0 = scmp.ne.s32.totalorder %s947_s26, %s1411_s17  ;;  %p1417_p2 = scmp.lt.s32.totalorder %s1411_s17, %s1411_s17 }
  0xc2   :  { %p1418_p3 = por %p1417_p2, %p1416_p1 }
  0xc4   :  { %p1419_p4 = pnand %p1418_p3, %p1412_p0 }
 0x172   :  { %v1046_v37 = vpop.f32.mrb[0].mxu0 }
 0x173   :  { %v1047_v39 = vpop.f32.mrb[1].mxu0 }
 0x174   :  { %v1048_v40 = vadd.f32 %v1047_v39, %v1046_v37  ;;  %v1049_v41 = vpop.f32.mrb[2].mxu0 }
 0x175   :  { %v1050_v42 = vpop.f32.mrb[3].mxu0 }
 0x176   :  { %v317_v43 = vadd.f32 %v1048_v40, %v961_v38  ;;  %v1051_v44 = vadd.f32 %v1050_v42, %v1049_v41 }
 0x178   :  { %v320_v45 = vadd.f32 %v1051_v44, %v961_v38  ;;  %v323_v46 = vmax.f32 %v317_v43, 0.0 }
 0x17a   :  { %v324_v47 = vmax.f32 %v320_v45, 0.0  ;;  %v1253_v45 = vld [vmem:[#allocation13 + $0x64] ss:$8 sps:$4 sm:$0xff]  }
 0x17c   :  { %v325_v48 = vpack.c.bf16 %v324_v47, %v323_v46  ;;  %v1251_v46 = vld [vmem:[#allocation13 + $0x60] ss:$8 sps:$4 sm:$0xff]   ;;  %v1256_v47 = vld [vmem:[#allocation13 + $0x74] ss:$8 sps:$4 sm:$0xff]  }
 0x17e   :  { %1105 = vmatmul.mubr.bf16.vlgmr.msra.gmra.mrb[0].mxu1 %v325_v48  ;;  %v1254_v48 = vld [vmem:[#allocation13 + $0x70] ss:$8 sps:$4 sm:$0xff]  }
 0x17f   :  { %1144 = vmatprep.mubr.msk.bf16.mxu1 %vm1457_vm0, %v1456_v0  ;;  %1129 = vmatpush3.bf16.msra.mxu1 %v1217_v51 }
 0x180   :  { %1130 = vmatprep.subr.bf16.mxu1 %v1456_v0 }
 0x183   :  { %1131 = vmatpush3.bf16.msra.mxu1 %v1218_v52 }
 0x184   :  { %1132 = vmatprep.subr.bf16.mxu1 %v1456_v0 }
 0x187   :  { %1133 = vmatpush3.bf16.msra.mxu1 %v1219_v53 }
 0x188   :  { %1134 = vmatprep.subr.bf16.mxu1 %v1456_v0 }
 0x18b   :  { %1135 = vmatpush3.bf16.msra.mxu1 %v1220_v54 }
 0x18c   :  { %1136 = vmatprep.subr.bf16.mxu1 %v1456_v0 }
 0x18f   :  { %1137 = vmatpush3.bf16.msra.mxu1 %v1221_v55 }
 0x190   :  { %1138 = vmatprep.subr.bf16.mxu1 %v1456_v0 }
 0x193   :  { %1139 = vmatpush3.bf16.msra.mxu1 %v1222_v56 }
 0x194   :  { %1140 = vmatprep.subr.bf16.mxu1 %v1456_v0 }
 0x197   :  { %1141 = vmatpush3.bf16.msra.mxu1 %v1223_v4 }
 0x198   :  { %1142 = vmatprep.subr.bf16.mxu1 %v1456_v0 }
 0x19b   :  { %1143 = vmatpush3.bf16.msra.mxu1 %v1224_v5 }
 0x19c   :  { %894 = vmatprep.subr.bf16.mxu1 %v1235_v25 }
 0x251   :  { %v431_v58 = vpop.f32.mrb[0].mxu1 }
 0x252   :  { %v432_v59 = vadd.f32 %v978_v57, %v431_v58  ;;  %v1106_v60 = vpop.f32.mrb[1].mxu1 }
 0x253   :  { %v434_v61 = vpop.f32.mrb[2].mxu1  ;;  %v804_v60 = vlaneseq }
 0x254   :  { %v435_v62 = vadd.f32 %v978_v57, %v434_v61  ;;  %v1107_v63 = vpop.f32.mrb[3].mxu1  ;;  %v438_v1 = vmax.f32 %v432_v59, 0.0 }
 0x255   :  { %v805_v61 = vshrl.u32 %v804_v60, 7  ;;  %v802_v63 = vld [vmem:[%s1724_s12] sm:$0x3] }
 0x256   :  { %v439_v2 = vmax.f32 %v435_v62, 0.0 }
 0x257   :  { %v806_v62 = vsub.s32 0, %v805_v61 }
 0x258   :  { %v440_v3 = vpack.c.bf16 %v439_v2, %v438_v1  ;;  %v810_v1 = vsub.s32 1, %v805_v61 }
 0x259   :  { %v807_v2 = vrot.slane %v802_v63, %v806_v62 }
 0x25a   :  { %1125 = vmatmul.mubr.bf16.vlgmr.msra.gmra.mrb[4].mxu0 %v440_v3  ;;  %v811_v3 = vrot.slane %v802_v63, %v810_v1 }
 0x25b   :  { %1164 = vmatprep.mubr.msk.bf16.mxu0 %vm1457_vm0, %v1456_v0  ;;  %1149 = vmatpush3.bf16.msra.mxu0 %v1225_v6 }
 0x25c   :  { %1150 = vmatprep.subr.bf16.mxu0 %v1456_v0 }
 0x25f   :  { %1151 = vmatpush3.bf16.msra.mxu0 %v1226_v7 }
 0x260   :  { %1152 = vmatprep.subr.bf16.mxu0 %v1456_v0 }
 0x263   :  { %1153 = vmatpush3.bf16.msra.mxu0 %v1227_v8 }
 0x264   :  { %1154 = vmatprep.subr.bf16.mxu0 %v1456_v0 }
 0x267   :  { %1155 = vmatpush3.bf16.msra.mxu0 %v1228_v9 }
 0x268   :  { %1156 = vmatprep.subr.bf16.mxu0 %v1456_v0 }
 0x26b   :  { %1157 = vmatpush3.bf16.msra.mxu0 %v1229_v10 }
 0x26c   :  { %1158 = vmatprep.subr.bf16.mxu0 %v1456_v0 }
 0x26f   :  { %1159 = vmatpush3.bf16.msra.mxu0 %v1230_v11 }
 0x270   :  { %1160 = vmatprep.subr.bf16.mxu0 %v1456_v0 }
 0x273   :  { %1161 = vmatpush3.bf16.msra.mxu0 %v1231_v22 }
 0x274   :  { %1162 = vmatprep.subr.bf16.mxu0 %v1456_v0  ;;  %v1245_v0 = vld [vmem:[#allocation13 + $0x40] ss:$8 sps:$4 sm:$0xff]  }
 0x277   :  { %1163 = vmatpush3.bf16.msra.mxu0 %v1232_v23 }
 0x32d   :  { %v546_v13 = vpop.f32.mrb[4].mxu0 }
 0x32e   :  { %v547_v14 = vadd.f32 %v987_v12, %v546_v13  ;;  %v1126_v15 = vpop.f32.mrb[5].mxu0 }
 0x32f   :  { %v549_v16 = vpop.f32.mrb[6].mxu0 }
 0x330   :  { %v550_v17 = vadd.f32 %v987_v12, %v549_v16  ;;  %v1127_v18 = vpop.f32.mrb[7].mxu0  ;;  %v553_v19 = vmax.f32 %v547_v14, 0.0 }
 0x332   :  { %v554_v20 = vmax.f32 %v550_v17, 0.0 }
 0x334   :  { %v555_v21 = vpack.c.bf16 %v554_v20, %v553_v19 }
 0x336   :  { %1145 = vmatmul.mubr.bf16.vlgmr.msra.gmra.mrb[4].mxu1 %v555_v21 }
 0x337   :  { %895 = vmatpush1.bf16.msra.mxu1 %v1233_v24  ;;  %926 = vmatprep.mubr.bf16.mxu1 %v1458_v49 }
 0x338   :  { %896 = vmatprep.subr.bf16.mxu1 %v1238_v26 }
 0x33b   :  { %897 = vmatpush1.bf16.msra.mxu1 %v1236_v27 }
 0x33c   :  { %898 = vmatprep.subr.bf16.mxu1 %v1241_v28 }
 0x33f   :  { %899 = vmatpush1.bf16.msra.mxu1 %v1239_v29 }
 0x340   :  { %900 = vmatprep.subr.bf16.mxu1 %v1244_v30 }
 0x343   :  { %901 = vmatpush1.bf16.msra.mxu1 %v1242_v31 }
 0x344   :  { %902 = vmatprep.subr.bf16.mxu1 %v1247_v32 }
 0x347   :  { %903 = vmatpush1.bf16.msra.mxu1 %v1245_v0 }
 0x348   :  { %904 = vmatprep.subr.bf16.mxu1 %v1250_v33 }
 0x34b   :  { %905 = vmatpush1.bf16.msra.mxu1 %v1248_v34 }
 0x34c   :  { %906 = vmatprep.subr.bf16.mxu1 %v1253_v45 }
 0x34f   :  { %907 = vmatpush1.bf16.msra.mxu1 %v1251_v46 }
 0x350   :  { %908 = vmatprep.subr.bf16.mxu1 %v1256_v47 }
 0x353   :  { %909 = vmatpush1.bf16.msra.mxu1 %v1254_v48 }
 0x409   :  { %v661_v36 = vpop.f32.mrb[4].mxu1 }
 0x40a   :  { %v662_v37 = vadd.f32 %v996_v35, %v661_v36  ;;  %v1146_v38 = vpop.f32.mrb[5].mxu1 }
 0x40b   :  { %v664_v39 = vpop.f32.mrb[6].mxu1 }
 0x40c   :  { %v665_v40 = vadd.f32 %v996_v35, %v664_v39  ;;  %v1147_v41 = vpop.f32.mrb[7].mxu1  ;;  %v668_v42 = vmax.f32 %v662_v37, 0.0 }
 0x40e   :  { %v669_v43 = vmax.f32 %v665_v40, 0.0 }
 0x410   :  { %v670_v44 = vpack.c.bf16 %v669_v43, %v668_v42 }
 0x412   :  { %1165 = vmatmul.mubr.bf16.vlgmr.msra.gmra.mrb[8].mxu0 %v670_v44 }
 0x4e5   :  { %v776_v51 = vpop.f32.mrb[8].mxu0 }
 0x4e6   :  { %v777_v52 = vadd.f32 %v1005_v50, %v776_v51  ;;  %v1166_v53 = vpop.f32.mrb[9].mxu0 }
 0x4e7   :  { %v779_v54 = vpop.f32.mrb[10].mxu0 }
 0x4e8   :  { %v780_v55 = vadd.f32 %v1005_v50, %v779_v54  ;;  %v1167_v56 = vpop.f32.mrb[11].mxu0  ;;  %v783_v57 = vmax.f32 %v777_v52, 0.0 }
 0x4ea   :  { %v784_v58 = vmax.f32 %v780_v55, 0.0 }
 0x4ec   :  { %v785_v59 = vpack.c.bf16 %v784_v58, %v783_v57 }
 0x4ee   :  { %927 = vmatmul.mubr.bf16.vlgmr.msra.gmra.mrb[8].mxu1 %v785_v59 }
 0x5c1   :  { %v928_v4 = vpop.f32.mrb[8].mxu1 }
 0x5c2   :  { %v929_v5 = vadd.f32 %v928_v4, %v807_v2  ;;  %v930_v6 = vpop.f32.mrb[9].mxu1 }
 0x5c3   :  { %v931_v7 = vadd.f32 %v930_v6, %v811_v3  ;;  %v932_v8 = vpop.f32.mrb[10].mxu1 }
 0x5c4   :  { %937 = vst [vmem:[#allocation14] sm:$0xff] %v929_v5  ;;  %v933_v9 = vadd.f32 %v932_v8, %v807_v2  ;;  %v934_v10 = vpop.f32.mrb[11].mxu1 }
 0x5c5   :  { %938 = vst [vmem:[#allocation14 + $0x8] sm:$0xff] %v931_v7  ;;  %v935_v11 = vadd.f32 %v934_v10, %v811_v3 }
 0x5c6   :  { %939 = vst [vmem:[#allocation14 + $0x10] sm:$0xff] %v933_v9 }
 0x5c7   :  { %940 = vst [vmem:[#allocation14 + $0x18] sm:$0xff] %v935_v11 }
 0x5c8   :  { %1422 = shalt.err (!%p1419_p4)
}
 0x5c9   :  { %s1423_s21 = scalar_lea.hbm %s1725_s13, 512 }
 0x5ca   :  { %p1424_p5 = scmp.ne.s32.totalorder %s1725_s13, %s1423_s21  ;;  %p1427_p6 = scmp.lt.u32.totalorder %s1423_s21, %s1725_s13 }
 0x5cc   :  { %p1429_p7 = pnand %p1427_p6, %p1424_p5 }
 0x5ce   :  { %1432 = shalt.err (!%p1429_p7)
}
 0x5cf   :  { %952 = dma.vmem_to_hbm [thread:$0]  %s947_s26, 512, %s1725_s13, [#allocation4], %s1449_s9, %s1449_s9, %s1450_s25  }
 0x5d0   :  { %1441 = dma.done.wait [#allocation4], 512  }
 0x5d1   :  { %1442 = vsyncadd [#allocation4], 4294966784 }
 0x5d2   :  { %956 = vsyncpa [#allocation3], 1 }
 0x5d3   :  { %957 = vsyncpa [#allocation6], 1 }
 0x5d4   :  { %958 = vsyncpa [#allocation9], 1 }
 0x5d5   :  { %959 = vsyncpa [#allocation12], 1 }
 0x5d6   :  { %960 = vsyncpa [#allocation4], 1 }

</bundles_post_ra>
